<compile_context>
chip_gen: v7x
topology: tpu7x:2x2x1
jax: 0.10.0
libtpu: 0.0.40
codegen_flags: <defaults>
</compile_context>

<pallas_src>
import functools

import jax
import jax.numpy as jnp
from jax.experimental import pallas as pl
from jax.experimental.pallas import tpu as pltpu


H_LOGICAL = 1000      # hidden size of the PyTorch module
H = 1024              # padded hidden size (multiple of 128)
IN_FEATURES = 4
OUT_FEATURES = 1


def mlp_kernel(x_ref, w1_ref, b1_ref, w2_ref, b2_ref, w3_ref, b3_ref, o_ref,
               *, add_b3):
    """One grid step: full layer 1, then this step's slab of layer-2 output
    columns and the matching slice of layer 3's contraction, emitting a
    partial (B, 1) result."""
    x = x_ref[...]                                    # (B, 4)   f32
    w1 = w1_ref[...]                                  # (4, H)   f32
    b1 = b1_ref[...]                                  # (1, H)   f32

    # ---- Layer 1: Linear(4, H) + ReLU on the VPU (K=4 is too small for MXU).
    h1 = x[:, 0:1] * w1[0:1, :]
    for k in range(1, IN_FEATURES):
        h1 = h1 + x[:, k:k + 1] * w1[k:k + 1, :]
    h1 = jnp.maximum(h1 + b1, 0.0)                    # (B, H)   f32

    # ---- Layer 2 (this step's slab of output columns), MXU bf16 -> f32 acc.
    h2 = jnp.dot(h1.astype(jnp.bfloat16), w2_ref[0],
                 preferred_element_type=jnp.float32)  # (B, Hc)  f32
    h2 = jnp.maximum(h2 + b2_ref[...], 0.0)

    # ---- Layer 3 partial: lane-dense (1, Hc) w3 row, VPU mul + lane reduce.
    out = jnp.sum(h2 * w3_ref[...], axis=-1, keepdims=True)   # (B, 1) f32

    if add_b3:
        out = out + b3_ref[...]
    o_ref[0] = out


@functools.partial(jax.jit, static_argnames=("num_cores",))
def mlp_forward(x, w1, b1, w2_slabs, b2, w3_row, b3, *, num_cores):
    """x: (B, 4) f32. Weights already padded to H=1024; w2_slabs is
    (num_cores, H, H/num_cores) bf16; w3_row is the transposed (1, H) f32 row."""
    B = x.shape[0]
    Hc = H // num_cores
    add_b3_in_kernel = (num_cores == 1)

    partials = pl.pallas_call(
        functools.partial(mlp_kernel, add_b3=add_b3_in_kernel),
        out_shape=jax.ShapeDtypeStruct((num_cores, B, OUT_FEATURES),
                                       jnp.float32),
        grid=(num_cores,),
        in_specs=[
            pl.BlockSpec((B, IN_FEATURES), lambda i: (0, 0)),   # x
            pl.BlockSpec((IN_FEATURES, H), lambda i: (0, 0)),   # w1
            pl.BlockSpec((1, H),           lambda i: (0, 0)),   # b1
            pl.BlockSpec((1, H, Hc),       lambda i: (i, 0, 0)),  # w2 slab (contiguous)
            pl.BlockSpec((1, Hc),          lambda i: (0, i)),   # b2 column slice
            pl.BlockSpec((1, Hc),          lambda i: (0, i)),   # w3 row slice
            pl.BlockSpec((1, OUT_FEATURES), lambda i: (0, 0)),  # b3
        ],
        out_specs=pl.BlockSpec((1, B, OUT_FEATURES), lambda i: (i, 0, 0)),
        compiler_params=pltpu.CompilerParams(
            dimension_semantics=("parallel",),
            vmem_limit_bytes=16 << 20,
        ),
    )(x, w1, b1, w2_slabs, b2, w3_row, b3)

    if num_cores == 1:
        # Single-step kernel already added b3; just drop the leading axis.
        return partials[0]
    # Sum the per-core partials and add b3 once (fused in the same jit).
    return partials.sum(axis=0) + b3


def num_grid_cores():
    """2-way core split only on v7x (2 TensorCores / chip); single step on
    single-TC chips (v5e / v6e) or when the device kind is unknown."""
    try:
        kind = jax.devices()[0].device_kind.lower()
    except Exception:
        return 1
    return 2 if ("v7" in kind or "7x" in kind) else 1


def init_params(key):
    """Deterministic init mimicking PyTorch Linear defaults
    (uniform in [-1/sqrt(fan_in), 1/sqrt(fan_in)]), weights stored as
    (in_features, out_features), logical (unpadded) shapes."""
    dims = [(IN_FEATURES, H_LOGICAL), (H_LOGICAL, H_LOGICAL),
            (H_LOGICAL, OUT_FEATURES)]
    params = []
    for fan_in, fan_out in dims:
        key, kw, kb = jax.random.split(key, 3)
        bound = 1.0 / jnp.sqrt(float(fan_in))
        w = jax.random.uniform(kw, (fan_in, fan_out), jnp.float32,
                               minval=-bound, maxval=bound)
        b = jax.random.uniform(kb, (1, fan_out), jnp.float32,
                               minval=-bound, maxval=bound)
        params.extend([w, b])
    return params


def prepare_weights(w1, b1, w2, b2, w3, b3, num_cores):
    """Zero-pad the hidden dim 1000 -> 1024 (math unchanged: padded h1/h2
    lanes are exactly 0 and padded w3 lanes are 0), cast w2 to bf16, lay w2
    out as num_cores contiguous column slabs, and transpose w3 to a
    lane-dense (1, H) row."""
    p = H - H_LOGICAL
    w1p = jnp.pad(w1, ((0, 0), (0, p)))
    b1p = jnp.pad(b1, ((0, 0), (0, p)))
    w2p = jnp.pad(w2, ((0, p), (0, p))).astype(jnp.bfloat16)   # (H, H) bf16
    b2p = jnp.pad(b2, ((0, 0), (0, p)))
    w3_row = jnp.pad(w3.T, ((0, 0), (0, p)))                   # (1, H) f32

    Hc = H // num_cores
    # Split w2's output columns into contiguous per-core slabs.
    w2_slabs = jnp.asarray(w2p.reshape(H, num_cores, Hc).transpose(1, 0, 2))
    return w1p, b1p, w2_slabs, b2p, w3_row, b3


def reference_forward(x, w1, b1, w2, b2, w3, b3):
    h1 = jnp.maximum(x @ w1 + b1, 0.0)
    h2 = jnp.maximum(h1 @ w2 + b2, 0.0)
    return h2 @ w3 + b3


if __name__ == "__main__":
    key = jax.random.PRNGKey(0)
    key, kx = jax.random.split(key)

    B = 8  # small sublane-aligned batch
    x = jax.random.normal(kx, (B, IN_FEATURES), jnp.float32)

    w1, b1, w2, b2, w3, b3 = init_params(key)

    num_cores = num_grid_cores()
    w1p, b1p, w2_slabs, b2p, w3_row, b3p = prepare_weights(
        w1, b1, w2, b2, w3, b3, num_cores)

    out = mlp_forward(x, w1p, b1p, w2_slabs, b2p, w3_row, b3p,
                      num_cores=num_cores)
    out = jax.block_until_ready(out)

    # Reference: f32 math with the same bf16-quantized w2, unpadded shapes.
    w2_deq = w2.astype(jnp.bfloat16).astype(jnp.float32)
    ref = reference_forward(x, w1, b1, w2_deq, b2, w3, b3)

    assert out.shape == (B, OUT_FEATURES), out.shape
    assert jnp.allclose(out, ref, atol=1e-2, rtol=1e-2), (
        float(jnp.max(jnp.abs(out - ref))))

    print("KERNEL_OK")
</pallas_src>

<mosaic_0001>
module attributes {stable_mosaic.version = 11 : i64} {
  func.func @mlp_kernel(%arg0: i32, %arg1: memref<8x4xf32, #tpu.memory_space<vmem>>, %arg2: memref<4x1024xf32, #tpu.memory_space<vmem>>, %arg3: memref<1x1024xf32, #tpu.memory_space<vmem>>, %arg4: memref<1x1024x1024xbf16, #tpu.memory_space<vmem>>, %arg5: memref<1x1024xf32, #tpu.memory_space<vmem>>, %arg6: memref<1x1024xf32, #tpu.memory_space<vmem>>, %arg7: memref<1x1xf32, #tpu.memory_space<vmem>>, %arg8: memref<1x8x1xf32, #tpu.memory_space<vmem>>) attributes {dimension_semantics = [#tpu.dimension_semantics<parallel>], iteration_bounds = array<i64: 1>, scalar_prefetch = 0 : i64, scratch_operands = 0 : i64, tpu.core_type = #tpu.core_type<tc>, window_params = [{pipeline_mode = #tpu.pipeline_mode<synchronous>, transform_indices = @transform_0, window_bounds = array<i64: 8, 4>}, {pipeline_mode = #tpu.pipeline_mode<synchronous>, transform_indices = @transform_1, window_bounds = array<i64: 4, 1024>}, {pipeline_mode = #tpu.pipeline_mode<synchronous>, transform_indices = @transform_2, window_bounds = array<i64: 1, 1024>}, {transform_indices = @transform_3, window_bounds = array<i64: 1, 1024, 1024>}, {transform_indices = @transform_4, window_bounds = array<i64: 1, 1024>}, {transform_indices = @transform_5, window_bounds = array<i64: 1, 1024>}, {pipeline_mode = #tpu.pipeline_mode<synchronous>, transform_indices = @transform_6, window_bounds = array<i64: 1, 1>}, {transform_indices = @transform_7, window_bounds = array<i64: 1, 8, 1>}]} {
    %c0 = arith.constant 0 : index
    %c0_0 = arith.constant 0 : index
    %0 = vector.load %arg1[%c0, %c0_0] : memref<8x4xf32, #tpu.memory_space<vmem>>, vector<8x4xf32>
    %c0_1 = arith.constant 0 : index
    %c0_2 = arith.constant 0 : index
    %1 = vector.load %arg2[%c0_1, %c0_2] : memref<4x1024xf32, #tpu.memory_space<vmem>>, vector<4x1024xf32>
    %c0_3 = arith.constant 0 : index
    %c0_4 = arith.constant 0 : index
    %2 = vector.load %arg3[%c0_3, %c0_4] : memref<1x1024xf32, #tpu.memory_space<vmem>>, vector<1x1024xf32>
    %3 = vector.extract_strided_slice %0 {offsets = [0, 0], sizes = [8, 1], strides = [1, 1]} : vector<8x4xf32> to vector<8x1xf32>
    %4 = vector.extract_strided_slice %1 {offsets = [0, 0], sizes = [1, 1024], strides = [1, 1]} : vector<4x1024xf32> to vector<1x1024xf32>
    %5 = vector.broadcast %3 : vector<8x1xf32> to vector<8x1024xf32>
    %6 = vector.broadcast %4 : vector<1x1024xf32> to vector<8x1024xf32>
    %7 = arith.mulf %5, %6 : vector<8x1024xf32>
    %8 = vector.extract_strided_slice %0 {offsets = [0, 1], sizes = [8, 1], strides = [1, 1]} : vector<8x4xf32> to vector<8x1xf32>
    %9 = vector.extract_strided_slice %1 {offsets = [1, 0], sizes = [1, 1024], strides = [1, 1]} : vector<4x1024xf32> to vector<1x1024xf32>
    %10 = vector.broadcast %8 : vector<8x1xf32> to vector<8x1024xf32>
    %11 = vector.broadcast %9 : vector<1x1024xf32> to vector<8x1024xf32>
    %12 = arith.mulf %10, %11 : vector<8x1024xf32>
    %13 = arith.addf %7, %12 : vector<8x1024xf32>
    %14 = vector.extract_strided_slice %0 {offsets = [0, 2], sizes = [8, 1], strides = [1, 1]} : vector<8x4xf32> to vector<8x1xf32>
    %15 = vector.extract_strided_slice %1 {offsets = [2, 0], sizes = [1, 1024], strides = [1, 1]} : vector<4x1024xf32> to vector<1x1024xf32>
    %16 = vector.broadcast %14 : vector<8x1xf32> to vector<8x1024xf32>
    %17 = vector.broadcast %15 : vector<1x1024xf32> to vector<8x1024xf32>
    %18 = arith.mulf %16, %17 : vector<8x1024xf32>
    %19 = arith.addf %13, %18 : vector<8x1024xf32>
    %20 = vector.extract_strided_slice %0 {offsets = [0, 3], sizes = [8, 1], strides = [1, 1]} : vector<8x4xf32> to vector<8x1xf32>
    %21 = vector.extract_strided_slice %1 {offsets = [3, 0], sizes = [1, 1024], strides = [1, 1]} : vector<4x1024xf32> to vector<1x1024xf32>
    %22 = vector.broadcast %20 : vector<8x1xf32> to vector<8x1024xf32>
    %23 = vector.broadcast %21 : vector<1x1024xf32> to vector<8x1024xf32>
    %24 = arith.mulf %22, %23 : vector<8x1024xf32>
    %25 = arith.addf %19, %24 : vector<8x1024xf32>
    %26 = vector.broadcast %2 : vector<1x1024xf32> to vector<8x1024xf32>
    %27 = arith.addf %25, %26 : vector<8x1024xf32>
    %cst = arith.constant 0.000000e+00 : f32
    %28 = vector.broadcast %cst : f32 to vector<8x1024xf32>
    %29 = arith.maximumf %27, %28 : vector<8x1024xf32>
    %30 = arith.truncf %29 : vector<8x1024xf32> to vector<8x1024xbf16>
    %c0_5 = arith.constant 0 : index
    %c0_6 = arith.constant 0 : index
    %c0_7 = arith.constant 0 : index
    %31 = vector.load %arg4[%c0_5, %c0_6, %c0_7] : memref<1x1024x1024xbf16, #tpu.memory_space<vmem>>, vector<1x1024x1024xbf16>
    %32 = vector.shape_cast %31 : vector<1x1024x1024xbf16> to vector<1024x1024xbf16>
    %cst_8 = arith.constant dense<0.000000e+00> : vector<8x1024xf32>
    %33 = tpu.matmul %30, %32, %cst_8 {dimension_numbers = #tpu.dot_dimension_numbers<[1], [0], [0], [1], [0, 0, 1, 1], [], []>} : vector<8x1024xbf16>, vector<1024x1024xbf16>, vector<8x1024xf32> -> vector<8x1024xf32>
    %c0_9 = arith.constant 0 : index
    %c0_10 = arith.constant 0 : index
    %34 = vector.load %arg5[%c0_9, %c0_10] : memref<1x1024xf32, #tpu.memory_space<vmem>>, vector<1x1024xf32>
    %35 = vector.broadcast %34 : vector<1x1024xf32> to vector<8x1024xf32>
    %36 = arith.addf %33, %35 : vector<8x1024xf32>
    %cst_11 = arith.constant 0.000000e+00 : f32
    %37 = vector.broadcast %cst_11 : f32 to vector<8x1024xf32>
    %38 = arith.maximumf %36, %37 : vector<8x1024xf32>
    %c0_12 = arith.constant 0 : index
    %c0_13 = arith.constant 0 : index
    %39 = vector.load %arg6[%c0_12, %c0_13] : memref<1x1024xf32, #tpu.memory_space<vmem>>, vector<1x1024xf32>
    %40 = vector.broadcast %39 : vector<1x1024xf32> to vector<8x1024xf32>
    %41 = arith.mulf %38, %40 : vector<8x1024xf32>
    %cst_14 = arith.constant dense<0.000000e+00> : vector<8xf32>
    %42 = vector.multi_reduction <add>, %41, %cst_14 [1] : vector<8x1024xf32> to vector<8xf32>
    %43 = vector.shape_cast %42 : vector<8xf32> to vector<8x1xf32>
    %c0_15 = arith.constant 0 : index
    %c0_16 = arith.constant 0 : index
    %44 = vector.load %arg7[%c0_15, %c0_16] : memref<1x1xf32, #tpu.memory_space<vmem>>, vector<1x1xf32>
    %45 = vector.broadcast %44 : vector<1x1xf32> to vector<8x1xf32>
    %46 = arith.addf %43, %45 : vector<8x1xf32>
    %c0_17 = arith.constant 0 : index
    %c0_18 = arith.constant 0 : index
    %c0_19 = arith.constant 0 : index
    %47 = vector.load %arg8[%c0_17, %c0_18, %c0_19] : memref<1x8x1xf32, #tpu.memory_space<vmem>>, vector<1x8x1xf32>
    %48 = vector.shape_cast %47 : vector<1x8x1xf32> to vector<8x1xf32>
    %49 = vector.shape_cast %46 : vector<8x1xf32> to vector<1x8x1xf32>
    tpu.vector_store %arg8[%c0_17, %c0_18, %c0_19], %49 {strides = array<i32>} : memref<1x8x1xf32, #tpu.memory_space<vmem>>, vector<1x8x1xf32>,
    return
  }
  func.func @transform_0(%arg0: i32) -> (i32, i32) {
    %c0_i32 = arith.constant 0 : i32
    %c0_i32_0 = arith.constant 0 : i32
    %c0_i32_1 = arith.constant 0 : i32
    return %c0_i32, %c0_i32_0 : i32, i32
  }
  func.func @transform_1(%arg0: i32) -> (i32, i32) {
    %c0_i32 = arith.constant 0 : i32
    %c0_i32_0 = arith.constant 0 : i32
    %c0_i32_1 = arith.constant 0 : i32
    return %c0_i32, %c0_i32_0 : i32, i32
  }
  func.func @transform_2(%arg0: i32) -> (i32, i32) {
    %c0_i32 = arith.constant 0 : i32
    %c0_i32_0 = arith.constant 0 : i32
    %c0_i32_1 = arith.constant 0 : i32
    return %c0_i32, %c0_i32_0 : i32, i32
  }
  func.func @transform_3(%arg0: i32) -> (i32, i32, i32) {
    %c0_i32 = arith.constant 0 : i32
    %c0_i32_0 = arith.constant 0 : i32
    %c0_i32_1 = arith.constant 0 : i32
    return %arg0, %c0_i32, %c0_i32_0 : i32, i32, i32
  }
  func.func @transform_4(%arg0: i32) -> (i32, i32) {
    %c0_i32 = arith.constant 0 : i32
    %c0_i32_0 = arith.constant 0 : i32
    return %c0_i32, %arg0 : i32, i32
  }
  func.func @transform_5(%arg0: i32) -> (i32, i32) {
    %c0_i32 = arith.constant 0 : i32
    %c0_i32_0 = arith.constant 0 : i32
    return %c0_i32, %arg0 : i32, i32
  }
  func.func @transform_6(%arg0: i32) -> (i32, i32) {
    %c0_i32 = arith.constant 0 : i32
    %c0_i32_0 = arith.constant 0 : i32
    %c0_i32_1 = arith.constant 0 : i32
    return %c0_i32, %c0_i32_0 : i32, i32
  }
  func.func @transform_7(%arg0: i32) -> (i32, i32, i32) {
    %c0_i32 = arith.constant 0 : i32
    %c0_i32_0 = arith.constant 0 : i32
    %c0_i32_1 = arith.constant 0 : i32
    return %arg0, %c0_i32, %c0_i32_0 : i32, i32, i32
  }
}

</mosaic_0001>

<bundles_post_ra>
// kernel: mlp_forward.1
= control target key start
LH: loop header
LB: loop body
LE: loop exit
PB: predicated region body
PF: predicated region fallthrough
CT: control target
= control target key end

     0   :  { %s5562_s0 = inlined_call_operand.vmem [shape: f32[8,4], index: 0, kind: input, shape index: {}]   ;;  %s5563_s1 = inlined_call_operand.hbm [shape: f32[4,1024], index: 1, kind: input, shape index: {}]   ;;  %s5564_s2 = inlined_call_operand.hbm [shape: f32[1,1024], index: 2, kind: input, shape index: {}]   ;;  %s5565_s3 = inlined_call_operand.hbm [shape: bf16[1,1024,1024], index: 3, kind: input, shape index: {}]   ;;  %s5566_s4 = inlined_call_operand.hbm [shape: f32[1,1024], index: 4, kind: input, shape index: {}]   ;;  %s5567_s5 = inlined_call_operand.hbm [shape: f32[1,1024], index: 5, kind: input, shape index: {}]   ;;  %s5568_s6 = inlined_call_operand.<no memory space> [shape: f32[1,1], index: 6, kind: input, shape index: {}]   ;;  %s5569_s7 = inlined_call_operand.vmem [shape: f32[1,8,1], index: 7, kind: output, shape index: {}]  }
   0x1   :  { %v12_v0 = vstv %s5568_s6 }
   0x2   :  { %13 = vst [vmem:[#allocation2] sm:$0x1] %v12_v0 }
   0x3   :  { %14 = vsyncpa [#allocation4], 0 }
   0x4   :  { %15 = vsyncpa [#allocation6], 0 }
   0x5   :  { %16 = vsyncpa [#allocation9], 0  ;;  %s5079_s26 = smov [#allocation5]   ;;  %s5080_s28 = smov [#allocation8]  }
   0x6   :  { %s35_s27 = sshll.u32 %s5079_s26, 4  ;;  %s57_s29 = sshll.u32 %s5080_s28, 4  ;;  %s36_s27 = int_to_ptr.vmem [resolvable:$true] %s35_s27  ;;  %s58_s29 = int_to_ptr.vmem [resolvable:$true] %s57_s29 }
   0x7   :  { %s4963_s9 = scalar_lea.hbm %s5564_s2, 128 }
   0x8   :  { %p4964_p0 = scmp.ne.s32.totalorder %s5564_s2, %s4963_s9  ;;  %p4967_p1 = scmp.lt.u32.totalorder %s4963_s9, %s5564_s2 }
   0xa   :  { %p4969_p2 = pnand %p4967_p1, %p4964_p0 }
   0xc   :  { %4972 = shalt.err (!%p4969_p2)
}
   0xd   :  { %s4973_s13 = scalar_lea.vmem %s36_s27, 128  ;;  %p4978_p4 = scmp.lt.s32.totalorder %s36_s27, %s36_s27 }
   0xe   :  { %p4974_p3 = scmp.ne.s32.totalorder %s36_s27, %s4973_s13  ;;  %p4979_p5 = scmp.lt.s32.totalorder %s4973_s13, %s4973_s13 }
  0x10   :  { %p4980_p6 = por %p4979_p5, %p4978_p4 }
  0x12   :  { %p4981_p7 = pnand %p4980_p6, %p4974_p3 }
  0x14   :  { %4984 = shalt.err (!%p4981_p7)
}
  0x15   :  { %38 = dma.hbm_to_vmem [thread:$0]  %s5564_s2, 128, %s36_s27, [#allocation6]  }
  0x16   :  { %s4985_s18 = scalar_lea.hbm %s5566_s4, 128 }
  0x17   :  { %p4986_p8 = scmp.ne.s32.totalorder %s5566_s4, %s4985_s18  ;;  %p4989_p9 = scmp.lt.u32.totalorder %s4985_s18, %s5566_s4 }
  0x19   :  { %p4991_p10 = pnand %p4989_p9, %p4986_p8 }
  0x1b   :  { %4994 = shalt.err (!%p4991_p10)
}
  0x1c   :  { %s4995_s23 = scalar_lea.vmem %s58_s29, 128  ;;  %p5000_p12 = scmp.lt.s32.totalorder %s58_s29, %s58_s29 }
  0x1d   :  { %p4996_p11 = scmp.ne.s32.totalorder %s58_s29, %s4995_s23  ;;  %p5001_p13 = scmp.lt.s32.totalorder %s4995_s23, %s4995_s23 }
  0x1f   :  { %p5002_p0 = por %p5001_p13, %p5000_p12 }
  0x21   :  { %p5003_p1 = pnand %p5002_p0, %p4996_p11 }
  0x23   :  { %5006 = shalt.err (!%p5003_p1)
}
  0x24   :  { %60 = dma.hbm_to_vmem [thread:$0]  %s5566_s4, 128, %s58_s29, [#allocation9]  }
  0x25   :  { %s5081_s25 = smov [#allocation3]   ;;  %s5082_s27 = smov [#allocation7]  }
  0x26   :  { %s25_s26 = sshll.u32 %s5081_s25, 4  ;;  %s44_s28 = sshll.u32 %s5082_s27, 4  ;;  %s26_s26 = int_to_ptr.vmem [resolvable:$true] %s25_s26  ;;  %s5157_s28 = int_to_ptr.vmem [resolvable:$true] %s44_s28 }
  0x27   :  { %s5007_s9 = scalar_lea.hbm %s5563_s1, 512 }
  0x28   :  { %p5008_p2 = scmp.ne.s32.totalorder %s5563_s1, %s5007_s9  ;;  %p5011_p3 = scmp.lt.u32.totalorder %s5007_s9, %s5563_s1 }
  0x2a   :  { %p5013_p4 = pnand %p5011_p3, %p5008_p2 }
  0x2c   :  { %5016 = shalt.err (!%p5013_p4)
}
  0x2d   :  { %s5017_s4 = scalar_lea.vmem %s26_s26, 512  ;;  %p5022_p6 = scmp.lt.s32.totalorder %s26_s26, %s26_s26 }
  0x2e   :  { %p5018_p5 = scmp.ne.s32.totalorder %s26_s26, %s5017_s4  ;;  %p5023_p7 = scmp.lt.s32.totalorder %s5017_s4, %s5017_s4 }
  0x30   :  { %p5024_p8 = por %p5023_p7, %p5022_p6 }
  0x32   :  { %p5025_p9 = pnand %p5024_p8, %p5018_p5 }
  0x34   :  { %5028 = shalt.err (!%p5025_p9)
}
  0x35   :  { %28 = dma.hbm_to_vmem [thread:$0]  %s5563_s1, 512, %s26_s26, [#allocation4]  }
  0x36   :  { %s5029_s16 = scalar_lea.hbm %s5565_s3, 65536 }
  0x37   :  { %p5030_p10 = scmp.ne.s32.totalorder %s5565_s3, %s5029_s16  ;;  %p5033_p11 = scmp.lt.u32.totalorder %s5029_s16, %s5565_s3 }
  0x39   :  { %p5035_p12 = pnand %p5033_p11, %p5030_p10 }
  0x3b   :  { %5038 = shalt.err (!%p5035_p12)
}
  0x3c   :  { %s5039_s21 = scalar_lea.vmem %s5157_s28, 65536  ;;  %p5044_p0 = scmp.lt.s32.totalorder %s5157_s28, %s5157_s28 }
  0x3d   :  { %p5040_p13 = scmp.ne.s32.totalorder %s5157_s28, %s5039_s21  ;;  %p5045_p1 = scmp.lt.s32.totalorder %s5039_s21, %s5039_s21 }
  0x3f   :  { %p5046_p2 = por %p5045_p1, %p5044_p0 }
  0x41   :  { %p5047_p3 = pnand %p5046_p2, %p5040_p13 }
  0x43   :  { %5050 = shalt.err (!%p5047_p3)
}
  0x44   :  { %s5083_s1 = smov 512   ;;  %s5084_s22 = smov 32  }
  0x45   :  { %50 = dma.hbm_to_vmem [thread:$0]  %s5565_s3, 65536, %s5157_s28, [#allocation6], %s5083_s1, %s5083_s1, %s5084_s22  }
  0x46   :  { %s5085_s24 = smov [#allocation10]   ;;  %s5051_s30 = scalar_lea.hbm %s5567_s5, 128 }
  0x47   :  { %s67_s25 = sshll.u32 %s5085_s24, 4  ;;  %p5052_p4 = scmp.ne.s32.totalorder %s5567_s5, %s5051_s30  ;;  %s68_s25 = int_to_ptr.vmem [resolvable:$true] %s67_s25 }
  0x48   :  { %p5055_p5 = scmp.lt.u32.totalorder %s5051_s30, %s5567_s5 }
  0x4a   :  { %p5057_p6 = pnand %p5055_p5, %p5052_p4 }
  0x4c   :  { %5060 = shalt.err (!%p5057_p6)
}
  0x4d   :  { %s5061_s12 = scalar_lea.vmem %s68_s25, 128  ;;  %p5066_p8 = scmp.lt.s32.totalorder %s68_s25, %s68_s25 }
  0x4e   :  { %p5062_p7 = scmp.ne.s32.totalorder %s68_s25, %s5061_s12  ;;  %p5067_p9 = scmp.lt.s32.totalorder %s5061_s12, %s5061_s12 }
  0x50   :  { %p5068_p10 = por %p5067_p9, %p5066_p8 }
  0x52   :  { %p5069_p11 = pnand %p5068_p10, %p5062_p7 }
  0x54   :  { %5072 = shalt.err (!%p5069_p11)
}
  0x55   :  { %70 = dma.hbm_to_vmem [thread:$0]  %s5567_s5, 128, %s68_s25, [#allocation9]  }
  0x56   :  { %5073 = dma.done.wait [#allocation4], 512  }
  0x57   :  { %5074 = vsyncadd [#allocation4], 4294966784 }
  0x58   :  { %5075 = dma.done.wait [#allocation6], 65664  }
  0x59   :  { %5076 = vsyncadd [#allocation6], 4294901632 }
  0x5a   :  { %5077 = dma.done.wait [#allocation9], 256  }
  0x5b   :  { %5078 = vsyncadd [#allocation9], 4294967040  ;;  %v5086_v1 = vmov 0   ;;  %v5087_v2 = vmov 2   ;;  %v88_v3 = vld [vmem:[%s5562_s0] sm:$0xff]  ;;  %v524_v4 = vld [vmem:[#allocation7] sm:$0xff] }
  0x5c   :  { %4958 = vset.pattern.permute.xlu0 %v5086_v1  ;;  %4960 = vset.pattern.permute.xlu1 %v5087_v2  ;;  %v528_v5 = vld [vmem:[#allocation7 + $0x20] sm:$0xff]  ;;  %v525_v7 = vld [vmem:[#allocation7 + $0x8] sm:$0xff]  ;;  %v5088_v21 = vmov 1   ;;  %v5089_v22 = vmov 3   ;;  %vm4369_vm0 = vcmask 7168  }
  0x5d   :  { %96 = vperm.xlu0 %4958, %v88_v3   ;;  %276 = vperm.xlu1 %4960, %v88_v3   ;;  %v4379_v6 = vcombine.high %v524_v4, %v528_v5  ;;  %v529_v8 = vld [vmem:[#allocation7 + $0x28] sm:$0xff]  ;;  %v4378_v9 = vcombine.low %v524_v4, %v528_v5  ;;  %v532_v10 = vld [vmem:[#allocation7 + $0x40] sm:$0xff] }
  0x5e   :  { %v4381_v11 = vcombine.high %v525_v7, %v529_v8  ;;  %v536_v12 = vld [vmem:[#allocation7 + $0x60] sm:$0xff]  ;;  %v533_v13 = vld [vmem:[#allocation7 + $0x48] sm:$0xff]  ;;  %v4380_v15 = vcombine.low %v525_v7, %v529_v8 }
  0x5f   :  { %v537_v14 = vld [vmem:[#allocation7 + $0x68] sm:$0xff]  ;;  %3638 = vmatprep.subr.bf16.mxu0 %v4379_v6  ;;  %v4387_v16 = vcombine.high %v532_v10, %v536_v12  ;;  %v540_v17 = vld [vmem:[#allocation7 + $0x80] sm:$0xff]  ;;  %v4386_v20 = vcombine.low %v532_v10, %v536_v12 }
  0x60   :  { %v544_v18 = vld [vmem:[#allocation7 + $0xa0] sm:$0xff]  ;;  %3802 = vmatprep.subr.bf16.mxu1 %v4381_v11  ;;  %3639 = vmatpush1.bf16.msra.mxu0 %v4378_v9  ;;  %v4389_v19 = vcombine.high %v533_v13, %v537_v14  ;;  %v541_v24 = vld [vmem:[#allocation7 + $0x88] sm:$0xff]  ;;  %v4388_v28 = vcombine.low %v533_v13, %v537_v14 }
  0x61   :  { %4959 = vset.pattern.permute.xlu0 %v5088_v21  ;;  %4961 = vset.pattern.permute.xlu1 %v5089_v22  ;;  %v4395_v23 = vcombine.high %v540_v17, %v544_v18  ;;  %v545_v25 = vld [vmem:[#allocation7 + $0xa8] sm:$0xff]  ;;  %v548_v26 = vld [vmem:[#allocation7 + $0xc0] sm:$0xff]  ;;  %v4394_v30 = vcombine.low %v540_v17, %v544_v18 }
  0x62   :  { %184 = vperm.xlu0 %4959, %v88_v3   ;;  %368 = vperm.xlu1 %4961, %v88_v3   ;;  %v552_v27 = vld [vmem:[#allocation7 + $0xe0] sm:$0xff]  ;;  %v4397_v29 = vcombine.high %v541_v24, %v545_v25  ;;  %v549_v32 = vld [vmem:[#allocation7 + $0xc8] sm:$0xff]  ;;  %v4396_v36 = vcombine.low %v541_v24, %v545_v25 }
  0x63   :  { %3803 = vmatpush1.bf16.msra.mxu1 %v4380_v15  ;;  %3640 = vmatprep.subr.bf16.mxu0 %v4387_v16  ;;  %v4403_v31 = vcombine.high %v548_v26, %v552_v27  ;;  %v553_v33 = vld [vmem:[#allocation7 + $0xe8] sm:$0xff]  ;;  %v556_v34 = vld [vmem:[#allocation7 + $0x100] sm:$0xff]  ;;  %v4402_v38 = vcombine.low %v548_v26, %v552_v27 }
  0x64   :  { %3804 = vmatprep.subr.bf16.mxu1 %v4389_v19  ;;  %3641 = vmatpush1.bf16.msra.mxu0 %v4386_v20  ;;  %v560_v35 = vld [vmem:[#allocation7 + $0x120] sm:$0xff]  ;;  %v4405_v37 = vcombine.high %v549_v32, %v553_v33  ;;  %v557_v40 = vld [vmem:[#allocation7 + $0x108] sm:$0xff]  ;;  %v4404_v44 = vcombine.low %v549_v32, %v553_v33 }
  0x65   :  { %3642 = vmatprep.subr.bf16.mxu0 %v4395_v23  ;;  %v4411_v39 = vcombine.high %v556_v34, %v560_v35  ;;  %v561_v41 = vld [vmem:[#allocation7 + $0x128] sm:$0xff]  ;;  %v564_v42 = vld [vmem:[#allocation7 + $0x140] sm:$0xff]  ;;  %v4410_v46 = vcombine.low %v556_v34, %v560_v35 }
  0x66   :  { %4962 = vset.pattern.permute.xlu0 %v5089_v22  ;;  %v568_v43 = vld [vmem:[#allocation7 + $0x160] sm:$0xff]  ;;  %v4413_v45 = vcombine.high %v557_v40, %v561_v41  ;;  %v565_v48 = vld [vmem:[#allocation7 + $0x148] sm:$0xff]  ;;  %v4412_v52 = vcombine.low %v557_v40, %v561_v41 }
  0x67   :  { %3805 = vmatpush1.bf16.msra.mxu1 %v4388_v28  ;;  %v4419_v47 = vcombine.high %v564_v42, %v568_v43  ;;  %v569_v49 = vld [vmem:[#allocation7 + $0x168] sm:$0xff]  ;;  %v572_v50 = vld [vmem:[#allocation7 + $0x180] sm:$0xff]  ;;  %v4418_v54 = vcombine.low %v564_v42, %v568_v43 }
  0x68   :  { %3806 = vmatprep.subr.bf16.mxu1 %v4397_v29  ;;  %3643 = vmatpush1.bf16.msra.mxu0 %v4394_v30  ;;  %v576_v51 = vld [vmem:[#allocation7 + $0x1a0] sm:$0xff]  ;;  %v4421_v53 = vcombine.high %v565_v48, %v569_v49  ;;  %v573_v56 = vld [vmem:[#allocation7 + $0x188] sm:$0xff]  ;;  %v4420_v60 = vcombine.low %v565_v48, %v569_v49 }
  0x69   :  { %3644 = vmatprep.subr.bf16.mxu0 %v4403_v31  ;;  %v4427_v55 = vcombine.high %v572_v50, %v576_v51  ;;  %v577_v57 = vld [vmem:[#allocation7 + $0x1a8] sm:$0xff]  ;;  %v580_v58 = vld [vmem:[#allocation7 + $0x1c0] sm:$0xff]  ;;  %v4426_v63 = vcombine.low %v572_v50, %v576_v51 }
  0x6a   :  { %v584_v59 = vld [vmem:[#allocation7 + $0x1e0] sm:$0xff]  ;;  %v4429_v62 = vcombine.high %v573_v56, %v577_v57  ;;  %v5207_v1 = vld [vmem:[#allocation7 + $0x408] sm:$0xff]  ;;  %v4428_v8 = vcombine.low %v573_v56, %v577_v57 }
  0x6b   :  { %3807 = vmatpush1.bf16.msra.mxu1 %v4396_v36  ;;  %v5203_v61 = vld [vmem:[#allocation7 + $0x400] sm:$0xff]  ;;  %v5209_v2 = vld [vmem:[#allocation7 + $0x428] sm:$0xff]  ;;  %v4435_v3 = vcombine.high %v580_v58, %v584_v59  ;;  %v4434_v12 = vcombine.low %v580_v58, %v584_v59 }
  0x6c   :  { %3808 = vmatprep.subr.bf16.mxu1 %v4405_v37  ;;  %3645 = vmatpush1.bf16.msra.mxu0 %v4402_v38  ;;  %v5205_v0 = vld [vmem:[#allocation7 + $0x420] sm:$0xff]  ;;  %v581_v4 = vld [vmem:[#allocation7 + $0x1c8] sm:$0xff] }
  0x6d   :  { %3646 = vmatprep.subr.bf16.mxu0 %v4411_v39  ;;  %v585_v5 = vld [vmem:[#allocation7 + $0x1e8] sm:$0xff]  ;;  %v588_v6 = vld [vmem:[#allocation7 + $0x200] sm:$0xff] }
  0x6e   :  { %v592_v7 = vld [vmem:[#allocation7 + $0x220] sm:$0xff]  ;;  %v4437_v11 = vcombine.high %v581_v4, %v585_v5  ;;  %v589_v14 = vld [vmem:[#allocation7 + $0x208] sm:$0xff]  ;;  %v4436_v18 = vcombine.low %v581_v4, %v585_v5 }
  0x6f   :  { %3809 = vmatpush1.bf16.msra.mxu1 %v4404_v44  ;;  %v4443_v13 = vcombine.high %v588_v6, %v592_v7  ;;  %v593_v15 = vld [vmem:[#allocation7 + $0x228] sm:$0xff]  ;;  %v596_v16 = vld [vmem:[#allocation7 + $0x240] sm:$0xff]  ;;  %v4442_v20 = vcombine.low %v588_v6, %v592_v7 }
  0x70   :  { %3810 = vmatprep.subr.bf16.mxu1 %v4413_v45  ;;  %3647 = vmatpush1.bf16.msra.mxu0 %v4410_v46  ;;  %v600_v17 = vld [vmem:[#allocation7 + $0x260] sm:$0xff]  ;;  %v4445_v19 = vcombine.high %v589_v14, %v593_v15  ;;  %v597_v22 = vld [vmem:[#allocation7 + $0x248] sm:$0xff]  ;;  %v4444_v26 = vcombine.low %v589_v14, %v593_v15 }
  0x71   :  { %3648 = vmatprep.subr.bf16.mxu0 %v4419_v47  ;;  %v4451_v21 = vcombine.high %v596_v16, %v600_v17  ;;  %v601_v23 = vld [vmem:[#allocation7 + $0x268] sm:$0xff]  ;;  %v604_v24 = vld [vmem:[#allocation7 + $0x280] sm:$0xff]  ;;  %v4450_v28 = vcombine.low %v596_v16, %v600_v17  ;;  %v4507_v17 = vcombine.high %v5203_v61, %v5205_v0 }
  0x72   :  { %v608_v25 = vld [vmem:[#allocation7 + $0x2a0] sm:$0xff]  ;;  %v4453_v27 = vcombine.high %v597_v22, %v601_v23  ;;  %v605_v30 = vld [vmem:[#allocation7 + $0x288] sm:$0xff]  ;;  %v4452_v34 = vcombine.low %v597_v22, %v601_v23 }
  0x73   :  { %3811 = vmatpush1.bf16.msra.mxu1 %v4412_v52  ;;  %v4459_v29 = vcombine.high %v604_v24, %v608_v25  ;;  %v609_v31 = vld [vmem:[#allocation7 + $0x2a8] sm:$0xff]  ;;  %v612_v32 = vld [vmem:[#allocation7 + $0x2c0] sm:$0xff]  ;;  %v4458_v36 = vcombine.low %v604_v24, %v608_v25  ;;  %v89_v24 = vld [vmem:[#allocation3] sm:$0xff] }
  0x74   :  { %3812 = vmatprep.subr.bf16.mxu1 %v4421_v53  ;;  %3649 = vmatpush1.bf16.msra.mxu0 %v4418_v54  ;;  %v616_v33 = vld [vmem:[#allocation7 + $0x2e0] sm:$0xff]  ;;  %v4461_v35 = vcombine.high %v605_v30, %v609_v31  ;;  %v613_v38 = vld [vmem:[#allocation7 + $0x2c8] sm:$0xff]  ;;  %v4460_v42 = vcombine.low %v605_v30, %v609_v31 }
  0x75   :  { %3650 = vmatprep.subr.bf16.mxu0 %v4427_v55  ;;  %v4467_v37 = vcombine.high %v612_v32, %v616_v33  ;;  %v617_v39 = vld [vmem:[#allocation7 + $0x2e8] sm:$0xff]  ;;  %v620_v40 = vld [vmem:[#allocation7 + $0x300] sm:$0xff]  ;;  %v4466_v44 = vcombine.low %v612_v32, %v616_v33 }
  0x76   :  { %v624_v41 = vld [vmem:[#allocation7 + $0x320] sm:$0xff]  ;;  %v4469_v43 = vcombine.high %v613_v38, %v617_v39  ;;  %v621_v46 = vld [vmem:[#allocation7 + $0x308] sm:$0xff]  ;;  %v4468_v50 = vcombine.low %v613_v38, %v617_v39 }
  0x77   :  { %3813 = vmatpush1.bf16.msra.mxu1 %v4420_v60  ;;  %v4475_v45 = vcombine.high %v620_v40, %v624_v41  ;;  %v625_v47 = vld [vmem:[#allocation7 + $0x328] sm:$0xff]  ;;  %v628_v48 = vld [vmem:[#allocation7 + $0x340] sm:$0xff]  ;;  %v4474_v52 = vcombine.low %v620_v40, %v624_v41 }
  0x78   :  { %3814 = vmatprep.subr.bf16.mxu1 %v4429_v62  ;;  %3651 = vmatpush1.bf16.msra.mxu0 %v4426_v63  ;;  %v632_v49 = vld [vmem:[#allocation7 + $0x360] sm:$0xff]  ;;  %v4477_v51 = vcombine.high %v621_v46, %v625_v47  ;;  %v629_v54 = vld [vmem:[#allocation7 + $0x348] sm:$0xff]  ;;  %v4476_v58 = vcombine.low %v621_v46, %v625_v47 }
  0x79   :  { %3652 = vmatprep.subr.bf16.mxu0 %v4435_v3  ;;  %v4483_v53 = vcombine.high %v628_v48, %v632_v49  ;;  %v633_v55 = vld [vmem:[#allocation7 + $0x368] sm:$0xff]  ;;  %v636_v56 = vld [vmem:[#allocation7 + $0x380] sm:$0xff]  ;;  %v4482_v60 = vcombine.low %v628_v48, %v632_v49  ;;  %v5269_v48 = vld [vmem:[#allocation5] sm:$0xff] }
  0x7a   :  { %v640_v57 = vld [vmem:[#allocation7 + $0x3a0] sm:$0xff]  ;;  %v4485_v59 = vcombine.high %v629_v54, %v633_v55  ;;  %v637_v63 = vld [vmem:[#allocation7 + $0x388] sm:$0xff]  ;;  %v4484_v6 = vcombine.low %v629_v54, %v633_v55 }
  0x7b   :  { %3815 = vmatpush1.bf16.msra.mxu1 %v4428_v8  ;;  %v4491_v62 = vcombine.high %v636_v56, %v640_v57  ;;  %v641_v3 = vld [vmem:[#allocation7 + $0x3a8] sm:$0xff]  ;;  %v644_v4 = vld [vmem:[#allocation7 + $0x3c0] sm:$0xff]  ;;  %v4490_v8 = vcombine.low %v636_v56, %v640_v57 }
  0x7c   :  { %3816 = vmatprep.subr.bf16.mxu1 %v4437_v11  ;;  %3653 = vmatpush1.bf16.msra.mxu0 %v4434_v12  ;;  %v648_v5 = vld [vmem:[#allocation7 + $0x3e0] sm:$0xff]  ;;  %v4493_v7 = vcombine.high %v637_v63, %v641_v3  ;;  %v645_v12 = vld [vmem:[#allocation7 + $0x3c8] sm:$0xff]  ;;  %v4492_v14 = vcombine.low %v637_v63, %v641_v3 }
  0x7d   :  { %3654 = vmatprep.subr.bf16.mxu0 %v4443_v13  ;;  %v4499_v11 = vcombine.high %v644_v4, %v648_v5  ;;  %v649_v13 = vld [vmem:[#allocation7 + $0x3e8] sm:$0xff]  ;;  %v4498_v16 = vcombine.low %v644_v4, %v648_v5  ;;  %v5223_v25 = vld [vmem:[#allocation3 + $0x8] sm:$0xff] }
  0x7e   :  { %v4501_v15 = vcombine.high %v645_v12, %v649_v13  ;;  %v5295_v63 = vld [vmem:[#allocation7 + $0x460] sm:$0xff] }
  0x7f   :  { %3817 = vmatpush1.bf16.msra.mxu1 %v4436_v18  ;;  %v4500_v18 = vcombine.low %v645_v12, %v649_v13 }
  0x80   :  { %3818 = vmatprep.subr.bf16.mxu1 %v4445_v19  ;;  %3655 = vmatpush1.bf16.msra.mxu0 %v4442_v20  ;;  %v4509_v19 = vcombine.high %v5207_v1, %v5209_v2  ;;  %v103_v20 = vlaneseq }
  0x81   :  { %3656 = vmatprep.subr.bf16.mxu0 %v4451_v21 }
  0x82   :  { %v104_v21 = vshrl.u32 %v103_v20, 7 }
  0x83   :  { %3819 = vmatpush1.bf16.msra.mxu1 %v4444_v26 }
  0x84   :  { %3820 = vmatprep.subr.bf16.mxu1 %v4453_v27  ;;  %3657 = vmatpush1.bf16.msra.mxu0 %v4450_v28  ;;  %v5219_v22 = vsub.s32 1, %v104_v21  ;;  %v5221_v23 = vsub.s32 5, %v104_v21  ;;  %v5226_v27 = vsub.s32 4, %v104_v21  ;;  %v5228_v28 = vsub.s32 6, %v104_v21 }
  0x85   :  { %3658 = vmatprep.subr.bf16.mxu0 %v4459_v29  ;;  %v5230_v29 = vld [vmem:[#allocation3 + $0x10] sm:$0xff]  ;;  %v5237_v33 = vsub.s32 7, %v104_v21  ;;  %v5247_v38 = vsub.s32 2, %v104_v21  ;;  %v5253_v41 = vsub.s32 3, %v104_v21 }
  0x86   :  { %5576 = vst [vmem:[#allocation14_spill] sm:$0xff] %v5221_v23  ;;  %v190_v26 = vrot.slane %v89_v24, %v5219_v22  ;;  %5577 = vst [vmem:[#allocation15_spill] sm:$0xff] %v5228_v28  ;;  %v194_v30 = vrot.slane %v89_v24, %v5221_v23  ;;  %v198_v31 = vrot.slane %v5223_v25, %v5219_v22 }
  0x87   :  { %3821 = vmatpush1.bf16.msra.mxu1 %v4452_v34  ;;  %v202_v32 = vrot.slane %v5223_v25, %v5221_v23  ;;  %v5239_v34 = vld [vmem:[#allocation3 + $0x18] sm:$0xff]  ;;  %v378_v49 = vrot.slane %v89_v24, %v5237_v33  ;;  %v374_v56 = vrot.slane %v89_v24, %v5253_v41  ;;  %v118_v57 = vrot.slane %v5223_v25, %v5226_v27 }
  0x88   :  { %3822 = vmatprep.subr.bf16.mxu1 %v4461_v35  ;;  %3659 = vmatpush1.bf16.msra.mxu0 %v4458_v36  ;;  %v5241_v35 = vsub.s32 0, %v104_v21  ;;  %v206_v36 = vrot.slane %v5230_v29, %v5219_v22  ;;  %v214_v39 = vrot.slane %v5239_v34, %v5219_v22  ;;  %v218_v40 = vrot.slane %v5239_v34, %v5221_v23 }
  0x89   :  { %3660 = vmatprep.subr.bf16.mxu0 %v4467_v37  ;;  %v210_v37 = vrot.slane %v5230_v29, %v5221_v23  ;;  %v5264_v46 = vrot.slane %v198_v31, %v5219_v22  ;;  %v5267_v47 = vrot.slane %v202_v32, %v5219_v22  ;;  %v290_v3 = vrot.slane %v5223_v25, %v5247_v38 }
  0x8a   :  { %v5281_v54 = vrot.slane %v214_v39, %v5219_v22  ;;  %v5284_v55 = vrot.slane %v218_v40, %v5219_v22  ;;  %v418_v4 = vrot.slane %v378_v49, %v5253_v41  ;;  %v298_v13 = vrot.slane %v5230_v29, %v5247_v38 }
  0x8b   :  { %3823 = vmatpush1.bf16.msra.mxu1 %v4460_v42  ;;  %v5256_v42 = vrot.slane %v190_v26, %v5219_v22  ;;  %v330_v20 = vrot.slane %v290_v3, %v5247_v38  ;;  %v382_v21 = vrot.slane %v5223_v25, %v5253_v41  ;;  %v302_v26 = vrot.slane %v5230_v29, %v5228_v28 }
  0x8c   :  { %3824 = vmatprep.subr.bf16.mxu1 %v4469_v43  ;;  %3661 = vmatpush1.bf16.msra.mxu0 %v4466_v44  ;;  %v110_v43 = vrot.slane %v89_v24, %v5226_v27  ;;  %v286_v44 = vrot.slane %v89_v24, %v5228_v28  ;;  %v394_v32 = vrot.slane %v5230_v29, %v5237_v33 }
  0x8d   :  { %3662 = vmatprep.subr.bf16.mxu0 %v4475_v45  ;;  %v5261_v45 = vrot.slane %v194_v30, %v5219_v22  ;;  %v422_v3 = vrot.slane %v382_v21, %v5253_v41  ;;  %v310_v40 = vrot.slane %v5239_v34, %v5228_v28 }
  0x8f   :  { %3825 = vmatpush1.bf16.msra.mxu1 %v4468_v50  ;;  %v5273_v50 = vrot.slane %v206_v36, %v5219_v22  ;;  %v122_v36 = vrot.slane %v5230_v29, %v5241_v35 }
  0x90   :  { %3826 = vmatprep.subr.bf16.mxu1 %v4477_v51  ;;  %3663 = vmatpush1.bf16.msra.mxu0 %v4474_v52  ;;  %v5276_v51 = vrot.slane %v210_v37, %v5219_v22  ;;  %v106_v52 = vrot.slane %v89_v24, %v5241_v35 }
  0x91   :  { %3664 = vmatprep.subr.bf16.mxu0 %v4483_v53  ;;  %v282_v53 = vrot.slane %v89_v24, %v5247_v38  ;;  %v126_v24 = vrot.slane %v5230_v29, %v5226_v27 }
  0x93   :  { %3827 = vmatpush1.bf16.msra.mxu1 %v4476_v58  ;;  %v150_v58 = vrot.slane %v110_v43, %v5241_v35  ;;  %v338_v43 = vrot.slane %v298_v13, %v5247_v38  ;;  %v162_v13 = vrot.slane %v122_v36, %v5241_v35 }
  0x94   :  { %3828 = vmatprep.subr.bf16.mxu1 %v4485_v59  ;;  %3665 = vmatpush1.bf16.msra.mxu0 %v4482_v60  ;;  %v326_v59 = vrot.slane %v286_v44, %v5247_v38  ;;  %v390_v44 = vrot.slane %v5230_v29, %v5253_v41  ;;  %v434_v29 = vrot.slane %v394_v32, %v5253_v41 }
  0x95   :  { %3666 = vmatprep.subr.bf16.mxu0 %v4491_v62  ;;  %v5293_v62 = vld [vmem:[#allocation7 + $0x440] sm:$0xff] }
  0x97   :  { %3829 = vmatpush1.bf16.msra.mxu1 %v4484_v6  ;;  %v294_v6 = vrot.slane %v5223_v25, %v5228_v28 }
  0x98   :  { %3830 = vmatprep.subr.bf16.mxu1 %v4493_v7  ;;  %3667 = vmatpush1.bf16.msra.mxu0 %v4490_v8  ;;  %v386_v7 = vrot.slane %v5223_v25, %v5237_v33  ;;  %v146_v8 = vrot.slane %v106_v52, %v5241_v35 }
  0x99   :  { %3668 = vmatprep.subr.bf16.mxu0 %v4499_v11  ;;  %v322_v11 = vrot.slane %v282_v53, %v5247_v38  ;;  %v334_v30 = vrot.slane %v294_v6, %v5247_v38  ;;  %v471_v53 = vrot.slane %v5269_v48, %v5247_v38  ;;  %v166_v6 = vrot.slane %v126_v24, %v5241_v35 }
  0x9a   :  { %v426_v31 = vrot.slane %v386_v7, %v5253_v41  ;;  %v342_v7 = vrot.slane %v302_v26, %v5247_v38  ;;  %v430_v24 = vrot.slane %v390_v44, %v5253_v41 }
  0x9b   :  { %3831 = vmatpush1.bf16.msra.mxu1 %v4492_v14  ;;  %v414_v14 = vrot.slane %v374_v56, %v5253_v41  ;;  %v483_v56 = vrot.slane %v5269_v48, %v5221_v23 }
  0x9c   :  { %3832 = vmatprep.subr.bf16.mxu1 %v4501_v15  ;;  %3669 = vmatpush1.bf16.msra.mxu0 %v4498_v16  ;;  %v158_v15 = vrot.slane %v118_v57, %v5241_v35 }
  0x9d   :  { %3679 = vmatprep.subr.bf16.mxu0 %v4507_v17  ;;  %v5316_v17 = vld [vmem:[#allocation7 + $0x448] sm:$0xff] }
  0x9f   :  { %3833 = vmatpush1.bf16.msra.mxu1 %v4500_v18  ;;  %v5318_v18 = vld [vmem:[#allocation7 + $0x468] sm:$0xff] }
  0xa0   :  { %3843 = vmatprep.subr.bf16.mxu1 %v4509_v19  ;;  %5578 = vst [vmem:[#allocation16_spill] sm:$0xff] %v5318_v18  ;;  %v114_v19 = vrot.slane %v5223_v25, %v5241_v35 }
  0xa2   :  { %v154_v52 = vrot.slane %v114_v19, %v5241_v35  ;;  %v134_v19 = vrot.slane %v5239_v34, %v5226_v27 }
  0xdc   :  { %v5335_v37 = vpop.permute.xlu0 %96  ;;  %v5337_v39 = vpop.permute.xlu1 %276 }
  0xdd   :  { %v353_v57 = vmul.f32 %v330_v20, %v5337_v39  ;;  %v176_v16 = vmul.f32 %v150_v58, %v5335_v37  ;;  %v352_v20 = vmul.f32 %v326_v59, %v5337_v39  ;;  %v5366_v21 = vmul.f32 %v338_v43, %v5337_v39 }
  0xde   :  { %v175_v36 = vmul.f32 %v146_v8, %v5335_v37  ;;  %v351_v49 = vmul.f32 %v322_v11, %v5337_v39  ;;  %v178_v25 = vmul.f32 %v158_v15, %v5335_v37  ;;  %v354_v10 = vmul.f32 %v334_v30, %v5337_v39 }
  0xdf   :  { %v177_v11 = vmul.f32 %v154_v52, %v5335_v37  ;;  %v180_v15 = vmul.f32 %v166_v6, %v5335_v37  ;;  %v356_v30 = vmul.f32 %v342_v7, %v5337_v39 }
  0xe1   :  { %v5369_v26 = vpop.permute.xlu0 %184  ;;  %v5371_v32 = vpop.permute.xlu1 %368 }
  0xe2   :  { %v259_v58 = vmul.f32 %v5256_v42, %v5369_v26  ;;  %v260_v59 = vmul.f32 %v5261_v45, %v5369_v26  ;;  %v261_v43 = vmul.f32 %v5264_v46, %v5369_v26  ;;  %v262_v44 = vmul.f32 %v5267_v47, %v5369_v26 }
  0xe3   :  { %v264_v8 = vmul.f32 %v5276_v51, %v5369_v26  ;;  %v444_v42 = vmul.f32 %v418_v4, %v5371_v32  ;;  %v443_v45 = vmul.f32 %v414_v14, %v5371_v32  ;;  %v446_v46 = vmul.f32 %v426_v31, %v5371_v32 }
  0xe4   :  { %v268_v9 = vadd.f32 %v260_v59, %v176_v16  ;;  %v267_v12 = vadd.f32 %v259_v58, %v175_v36  ;;  %v270_v5 = vadd.f32 %v262_v44, %v178_v25  ;;  %v269_v60 = vadd.f32 %v261_v43, %v177_v11 }
  0xe5   :  { %v445_v47 = vmul.f32 %v422_v3, %v5371_v32  ;;  %v272_v28 = vadd.f32 %v264_v8, %v180_v15  ;;  %v448_v52 = vmul.f32 %v434_v29, %v5371_v32  ;;  %v174_v16 = vrot.slane %v134_v19, %v5241_v35 }
  0xe6   :  { %v360_v23 = vadd.f32 %v352_v20, %v268_v9  ;;  %v359_v51 = vadd.f32 %v351_v49, %v267_v12  ;;  %v362_v6 = vadd.f32 %v354_v10, %v270_v5  ;;  %v361_v18 = vadd.f32 %v353_v57, %v269_v60 }
  0xe7   :  { %v402_v4 = vrot.slane %v5239_v34, %v5237_v33  ;;  %v364_v25 = vadd.f32 %v356_v30, %v272_v28  ;;  %v350_v31 = vrot.slane %v310_v40, %v5247_v38  ;;  %v130_v9 = vrot.slane %v5239_v34, %v5241_v35  ;;  %v668_v30 = vld [vmem:[#allocation7 + $0x480] sm:$0xff] }
  0xe8   :  { %v452_v7 = vadd.f32 %v444_v42, %v360_v23  ;;  %v451_v14 = vadd.f32 %v443_v45, %v359_v51  ;;  %v454_v36 = vadd.f32 %v446_v46, %v362_v6  ;;  %v453_v58 = vadd.f32 %v445_v47, %v361_v18  ;;  %v672_v47 = vld [vmem:[#allocation7 + $0x4a0] sm:$0xff]  ;;  %v669_v51 = vld [vmem:[#allocation7 + $0x488] sm:$0xff] }
  0xe9   :  { %v306_v12 = vrot.slane %v5239_v34, %v5247_v38  ;;  %v5579_v10 = vrot.slane %v5269_v48, %v5219_v22  ;;  %v5580_v5 = vrot.slane %v5269_v48, %v5241_v35  ;;  %v456_v49 = vadd.f32 %v448_v52, %v364_v25  ;;  %v673_v52 = vld [vmem:[#allocation7 + $0x4a8] sm:$0xff] }
  0xea   :  { %v398_v28 = vrot.slane %v5239_v34, %v5253_v41  ;;  %v263_v18 = vmul.f32 %v5273_v50, %v5369_v26  ;;  %v5581_v40 = vrot.slane %v5269_v48, %v5253_v41  ;;  %v5416_v3 = vadd.f32 %v471_v53, %v453_v58  ;;  %v680_v58 = vld [vmem:[#allocation7 + $0x4e0] sm:$0xff] }
  0xeb   :  { %v501_v60 = vadd.f32 %v5579_v10, %v452_v7  ;;  %v500_v23 = vadd.f32 %v5580_v5, %v451_v14  ;;  %v442_v29 = vrot.slane %v402_v4, %v5253_v41  ;;  %v266_v19 = vmul.f32 %v5284_v55, %v5369_v26 }
  0xec   :  { %v503_v57 = vadd.f32 %v5581_v40, %v454_v36  ;;  %v5421_v43 = vadd.f32 %v483_v56, %v456_v49  ;;  %v179_v34 = vmul.f32 %v162_v13, %v5335_v37  ;;  %v479_v50 = vrot.slane %v5269_v48, %v5226_v27  ;;  %v676_v36 = vld [vmem:[#allocation7 + $0x4c0] sm:$0xff] }
  0xed   :  { %v509_v20 = vmax.f32 %v501_v60, 0.0  ;;  %v508_v59 = vmax.f32 %v500_v23, 0.0  ;;  %v346_v8 = vrot.slane %v306_v12, %v5247_v38  ;;  %v182_v15 = vmul.f32 %v174_v16, %v5335_v37  ;;  %v681_v12 = vld [vmem:[#allocation7 + $0x4e8] sm:$0xff] }
  0xee   :  { %v511_v44 = vmax.f32 %v503_v57, 0.0  ;;  %v170_v55 = vrot.slane %v130_v9, %v5241_v35  ;;  %v271_v42 = vadd.f32 %v263_v18, %v179_v34  ;;  %v447_v56 = vmul.f32 %v430_v24, %v5371_v32  ;;  %v677_v9 = vld [vmem:[#allocation7 + $0x4c8] sm:$0xff] }
  0xef   :  { %v5427_v11 = vpack.c.bf16 %v509_v20, %v509_v20  ;;  %v5429_v53 = vpack.c.bf16 %v508_v59, %v508_v59  ;;  %v358_v45 = vmul.f32 %v350_v31, %v5337_v39  ;;  %v438_v13 = vrot.slane %v398_v28, %v5253_v41  ;;  %v5589_v59 = vld [vmem:[#allocation15_spill] sm:$0xff]  ;;  %v685_v34 = vld [vmem:[#allocation7 + $0x508] sm:$0xff] }
  0xf0   :  { %v265_v46 = vmul.f32 %v5281_v54, %v5369_v26  ;;  %v274_v6 = vadd.f32 %v266_v19, %v182_v15  ;;  %v450_v16 = vmul.f32 %v442_v29, %v5371_v32  ;;  %v5443_v24 = vpack.c.bf16 %v511_v44, %v511_v44  ;;  %v684_v19 = vld [vmem:[#allocation7 + $0x500] sm:$0xff] }
  0xf1   :  { %3670 = vmatprep.mubr.bf16.mxu0 %v5427_v11  ;;  %3834 = vmatprep.mubr.bf16.mxu1 %v5427_v11  ;;  %v363_v4 = vadd.f32 %v5366_v21, %v271_v42  ;;  %v357_v54 = vmul.f32 %v346_v8, %v5337_v39  ;;  %v5582_v26 = vcombine.low %v5203_v61, %v5205_v0  ;;  %v688_v44 = vld [vmem:[#allocation7 + $0x520] sm:$0xff] }
  0xf2   :  { %3671 = vmatmul.mubr.bf16.vlgmr.msra.gmra.mrb[0].mxu0 %v5429_v53  ;;  %3835 = vmatmul.mubr.bf16.vlgmr.msra.gmra.mrb[0].mxu1 %v5429_v53  ;;  %v5583_v7 = vcombine.low %v5207_v1, %v5209_v2  ;;  %v366_v14 = vadd.f32 %v358_v45, %v274_v6  ;;  %v491_v25 = vrot.slane %v5269_v48, %v5237_v33  ;;  %v5585_v1 = vld [vmem:[#allocation16_spill] sm:$0xff]  ;;  %v697_v45 = vld [vmem:[#allocation7 + $0x568] sm:$0xff] }
  0xf3   :  { %3680 = vmatpush1.bf16.msra.mxu0 %v5582_v26  ;;  %v181_v31 = vmul.f32 %v170_v55, %v5335_v37  ;;  %3711 = vmatprep.mubr.bf16.mxu0 %v5443_v24  ;;  %v4523_v21 = vcombine.high %v668_v30, %v672_v47  ;;  %v4525_v39 = vcombine.high %v669_v51, %v673_v52  ;;  %v692_v55 = vld [vmem:[#allocation7 + $0x540] sm:$0xff]  ;;  %v701_v6 = vld [vmem:[#allocation7 + $0x588] sm:$0xff] }
  0xf4   :  { %3844 = vmatpush1.bf16.msra.mxu1 %v5583_v7  ;;  %3875 = vmatprep.mubr.bf16.mxu1 %v5443_v24  ;;  %v455_v61 = vadd.f32 %v447_v56, %v363_v4  ;;  %v5584_v0 = vcombine.high %v5293_v62, %v5295_v63  ;;  %v5586_v2 = vcombine.high %v5316_v17, %v5585_v1  ;;  %v696_v42 = vld [vmem:[#allocation7 + $0x560] sm:$0xff]  ;;  %v693_v56 = vld [vmem:[#allocation7 + $0x548] sm:$0xff] }
  0xf5   :  { %v458_v37 = vadd.f32 %v450_v16, %v366_v14  ;;  %v273_v10 = vadd.f32 %v265_v46, %v181_v31  ;;  %v4522_v60 = vcombine.low %v668_v30, %v672_v47  ;;  %v449_v23 = vmul.f32 %v438_v13, %v5371_v32  ;;  %v705_v16 = vld [vmem:[#allocation7 + $0x5a8] sm:$0xff]  ;;  %v708_v14 = vld [vmem:[#allocation7 + $0x5c0] sm:$0xff] }
  0xf6   :  { %3681 = vmatprep.subr.bf16.mxu0 %v5584_v0  ;;  %3845 = vmatprep.subr.bf16.mxu1 %v5586_v2  ;;  %v5464_v5 = vadd.f32 %v479_v50, %v455_v61  ;;  %v5587_v49 = vcombine.low %v5293_v62, %v5295_v63  ;;  %v5588_v28 = vcombine.low %v5316_v17, %v5585_v1  ;;  %v689_v62 = vld [vmem:[#allocation7 + $0x528] sm:$0xff]  ;;  %v716_v0 = vld [vmem:[#allocation7 + $0x600] sm:$0xff] }
  0xf7   :  { %v4524_v18 = vcombine.low %v669_v51, %v673_v52  ;;  %v4531_v40 = vcombine.high %v676_v36, %v680_v58  ;;  %v5473_v57 = vadd.f32 %v491_v25, %v458_v37  ;;  %v4533_v29 = vcombine.high %v677_v9, %v681_v12  ;;  %v700_v51 = vld [vmem:[#allocation7 + $0x580] sm:$0xff]  ;;  %v709_v31 = vld [vmem:[#allocation7 + $0x5c8] sm:$0xff] }
  0xf8   :  { %3682 = vmatpush1.bf16.msra.mxu0 %v5587_v49  ;;  %3846 = vmatpush1.bf16.msra.mxu1 %v5588_v28  ;;  %v365_v20 = vadd.f32 %v357_v54, %v273_v10  ;;  %v487_v32 = vrot.slane %v5269_v48, %v5589_v59  ;;  %v4530_v17 = vcombine.low %v676_v36, %v680_v58  ;;  %v704_v52 = vld [vmem:[#allocation7 + $0x5a0] sm:$0xff]  ;;  %v717_v2 = vld [vmem:[#allocation7 + $0x608] sm:$0xff] }
  0xf9   :  { %3683 = vmatprep.subr.bf16.mxu0 %v4523_v21  ;;  %3847 = vmatprep.subr.bf16.mxu1 %v4525_v39  ;;  %v4532_v50 = vcombine.low %v677_v9, %v681_v12  ;;  %v4539_v8 = vcombine.high %v684_v19, %v688_v44  ;;  %v4541_v15 = vcombine.high %v685_v34, %v689_v62  ;;  %v712_v25 = vld [vmem:[#allocation7 + $0x5e0] sm:$0xff]  ;;  %v713_v21 = vld [vmem:[#allocation7 + $0x5e8] sm:$0xff] }
  0xfa   :  { %v457_v63 = vadd.f32 %v449_v23, %v365_v20  ;;  %v4538_v48 = vcombine.low %v684_v19, %v688_v44  ;;  %v4540_v13 = vcombine.low %v685_v34, %v689_v62  ;;  %v4547_v46 = vcombine.high %v692_v55, %v696_v42  ;;  %v720_v1 = vld [vmem:[#allocation7 + $0x620] sm:$0xff]  ;;  %v721_v9 = vld [vmem:[#allocation7 + $0x628] sm:$0xff] }
  0xfb   :  { %v4549_v47 = vcombine.high %v693_v56, %v697_v45  ;;  %v4546_v4 = vcombine.low %v692_v55, %v696_v42  ;;  %v4548_v54 = vcombine.low %v693_v56, %v697_v45  ;;  %v4555_v26 = vcombine.high %v700_v51, %v704_v52  ;;  %v724_v23 = vld [vmem:[#allocation7 + $0x640] sm:$0xff]  ;;  %v725_v28 = vld [vmem:[#allocation7 + $0x648] sm:$0xff] }
  0xfc   :  { %3684 = vmatpush1.bf16.msra.mxu0 %v4522_v60  ;;  %3848 = vmatpush1.bf16.msra.mxu1 %v4524_v18  ;;  %v5477_v30 = vadd.f32 %v487_v32, %v457_v63  ;;  %v4557_v7 = vcombine.high %v701_v6, %v705_v16  ;;  %v4554_v39 = vcombine.low %v700_v51, %v704_v52  ;;  %v728_v49 = vld [vmem:[#allocation7 + $0x660] sm:$0xff]  ;;  %v729_v18 = vld [vmem:[#allocation7 + $0x668] sm:$0xff] }
  0xfd   :  { %3685 = vmatprep.subr.bf16.mxu0 %v4531_v40  ;;  %3849 = vmatprep.subr.bf16.mxu1 %v4533_v29  ;;  %v4556_v36 = vcombine.low %v701_v6, %v705_v16  ;;  %v4563_v58 = vcombine.high %v708_v14, %v712_v25  ;;  %v4565_v61 = vcombine.high %v709_v31, %v713_v21  ;;  %v732_v32 = vld [vmem:[#allocation7 + $0x680] sm:$0xff]  ;;  %v733_v34 = vld [vmem:[#allocation7 + $0x688] sm:$0xff] }
  0xfe   :  { %v4562_v12 = vcombine.low %v708_v14, %v712_v25  ;;  %v4564_v37 = vcombine.low %v709_v31, %v713_v21  ;;  %v4571_v10 = vcombine.high %v716_v0, %v720_v1  ;;  %v4573_v60 = vcombine.high %v717_v2, %v721_v9  ;;  %v736_v44 = vld [vmem:[#allocation7 + $0x6a0] sm:$0xff]  ;;  %v737_v62 = vld [vmem:[#allocation7 + $0x6a8] sm:$0xff] }
  0xff   :  { %v4570_v40 = vcombine.low %v716_v0, %v720_v1  ;;  %v4572_v29 = vcombine.low %v717_v2, %v721_v9  ;;  %v4579_v19 = vcombine.high %v724_v23, %v728_v49  ;;  %v4581_v20 = vcombine.high %v725_v28, %v729_v18  ;;  %v744_v55 = vld [vmem:[#allocation7 + $0x6e0] sm:$0xff]  ;;  %v741_v42 = vld [vmem:[#allocation7 + $0x6c8] sm:$0xff] }
 0x100   :  { %3686 = vmatpush1.bf16.msra.mxu0 %v4530_v17  ;;  %3850 = vmatpush1.bf16.msra.mxu1 %v4532_v50  ;;  %v4578_v63 = vcombine.low %v724_v23, %v728_v49  ;;  %v4580_v17 = vcombine.low %v725_v28, %v729_v18  ;;  %v4587_v50 = vcombine.high %v732_v32, %v736_v44  ;;  %v745_v56 = vld [vmem:[#allocation7 + $0x6e8] sm:$0xff]  ;;  %v752_v51 = vld [vmem:[#allocation7 + $0x720] sm:$0xff] }
 0x101   :  { %3687 = vmatprep.subr.bf16.mxu0 %v4539_v8  ;;  %3851 = vmatprep.subr.bf16.mxu1 %v4541_v15  ;;  %v4589_v8 = vcombine.high %v733_v34, %v737_v62  ;;  %v740_v15 = vld [vmem:[#allocation7 + $0x6c0] sm:$0xff]  ;;  %v4586_v45 = vcombine.low %v732_v32, %v736_v44  ;;  %v749_v52 = vld [vmem:[#allocation7 + $0x708] sm:$0xff] }
 0x102   :  { %v753_v6 = vld [vmem:[#allocation7 + $0x728] sm:$0xff]  ;;  %v4594_v16 = vcombine.low %v740_v15, %v744_v55  ;;  %v760_v14 = vld [vmem:[#allocation7 + $0x760] sm:$0xff] }
 0x103   :  { %v757_v25 = vld [vmem:[#allocation7 + $0x748] sm:$0xff]  ;;  %v768_v0 = vld [vmem:[#allocation7 + $0x7a0] sm:$0xff] }
 0x104   :  { %3688 = vmatpush1.bf16.msra.mxu0 %v4538_v48  ;;  %3852 = vmatpush1.bf16.msra.mxu1 %v4540_v13  ;;  %v4588_v48 = vcombine.low %v733_v34, %v737_v62  ;;  %v4595_v13 = vcombine.high %v740_v15, %v744_v55  ;;  %v761_v31 = vld [vmem:[#allocation7 + $0x768] sm:$0xff]  ;;  %v776_v23 = vld [vmem:[#allocation7 + $0x7e0] sm:$0xff]  ;;  %v513_v15 = vmax.f32 %v5421_v43, 0.0 }
 0x105   :  { %3689 = vmatprep.subr.bf16.mxu0 %v4547_v46  ;;  %3853 = vmatprep.subr.bf16.mxu1 %v4549_v47  ;;  %v4597_v46 = vcombine.high %v741_v42, %v745_v56  ;;  %v748_v47 = vld [vmem:[#allocation7 + $0x700] sm:$0xff]  ;;  %v765_v1 = vld [vmem:[#allocation7 + $0x788] sm:$0xff] }
 0x106   :  { %v4602_v21 = vcombine.low %v748_v47, %v752_v51  ;;  %v769_v2 = vld [vmem:[#allocation7 + $0x7a8] sm:$0xff]  ;;  %v784_v32 = vld [vmem:[#allocation7 + $0x820] sm:$0xff] }
 0x107   :  { %v773_v49 = vld [vmem:[#allocation7 + $0x7c8] sm:$0xff]  ;;  %v788_v55 = vld [vmem:[#allocation7 + $0x840] sm:$0xff] }
 0x108   :  { %3690 = vmatpush1.bf16.msra.mxu0 %v4546_v4  ;;  %3854 = vmatpush1.bf16.msra.mxu1 %v4548_v54  ;;  %v4596_v4 = vcombine.low %v741_v42, %v745_v56  ;;  %v4603_v54 = vcombine.high %v748_v47, %v752_v51  ;;  %v777_v28 = vld [vmem:[#allocation7 + $0x7e8] sm:$0xff]  ;;  %v792_v42 = vld [vmem:[#allocation7 + $0x860] sm:$0xff]  ;;  %v5483_v47 = vpack.c.bf16 %v513_v15, %v513_v15 }
 0x109   :  { %3691 = vmatprep.subr.bf16.mxu0 %v4555_v26  ;;  %3855 = vmatprep.subr.bf16.mxu1 %v4557_v7  ;;  %v4605_v26 = vcombine.high %v749_v52, %v753_v6  ;;  %v756_v7 = vld [vmem:[#allocation7 + $0x740] sm:$0xff]  ;;  %v781_v44 = vld [vmem:[#allocation7 + $0x808] sm:$0xff]  ;;  %v4643_v51 = vcombine.high %v788_v55, %v792_v42 }
 0x10a   :  { %v4610_v9 = vcombine.low %v756_v7, %v760_v14  ;;  %v785_v34 = vld [vmem:[#allocation7 + $0x828] sm:$0xff]  ;;  %v836_v15 = vld [vmem:[#allocation7 + $0x9c0] sm:$0xff] }
 0x10b   :  { %v789_v56 = vld [vmem:[#allocation7 + $0x848] sm:$0xff] }
 0x10c   :  { %3692 = vmatpush1.bf16.msra.mxu0 %v4554_v39  ;;  %3856 = vmatpush1.bf16.msra.mxu1 %v4556_v36  ;;  %v4604_v39 = vcombine.low %v749_v52, %v753_v6  ;;  %v4611_v36 = vcombine.high %v756_v7, %v760_v14  ;;  %v796_v52 = vld [vmem:[#allocation7 + $0x880] sm:$0xff]  ;;  %v797_v43 = vld [vmem:[#allocation7 + $0x888] sm:$0xff] }
 0x10d   :  { %3693 = vmatprep.subr.bf16.mxu0 %v4563_v58  ;;  %3857 = vmatprep.subr.bf16.mxu1 %v4565_v61  ;;  %v4613_v58 = vcombine.high %v757_v25, %v761_v31  ;;  %v764_v61 = vld [vmem:[#allocation7 + $0x780] sm:$0xff] }
 0x10e   :  { %v4618_v18 = vcombine.low %v764_v61, %v768_v0  ;;  %v800_v6 = vld [vmem:[#allocation7 + $0x8a0] sm:$0xff] }
 0x10f   :  { %v804_v14 = vld [vmem:[#allocation7 + $0x8c0] sm:$0xff] }
 0x110   :  { %3694 = vmatpush1.bf16.msra.mxu0 %v4562_v12  ;;  %3858 = vmatpush1.bf16.msra.mxu1 %v4564_v37  ;;  %v4612_v12 = vcombine.low %v757_v25, %v761_v31  ;;  %v4619_v37 = vcombine.high %v764_v61, %v768_v0  ;;  %v808_v25 = vld [vmem:[#allocation7 + $0x8e0] sm:$0xff]  ;;  %v805_v31 = vld [vmem:[#allocation7 + $0x8c8] sm:$0xff] }
 0x111   :  { %3695 = vmatprep.subr.bf16.mxu0 %v4571_v10  ;;  %3859 = vmatprep.subr.bf16.mxu1 %v4573_v60  ;;  %v4621_v10 = vcombine.high %v765_v1, %v769_v2  ;;  %v772_v60 = vld [vmem:[#allocation7 + $0x7c0] sm:$0xff] }
 0x112   :  { %v4626_v62 = vcombine.low %v772_v60, %v776_v23  ;;  %v812_v0 = vld [vmem:[#allocation7 + $0x900] sm:$0xff] }
 0x114   :  { %3696 = vmatpush1.bf16.msra.mxu0 %v4570_v40  ;;  %3860 = vmatpush1.bf16.msra.mxu1 %v4572_v29  ;;  %v4620_v40 = vcombine.low %v765_v1, %v769_v2  ;;  %v4627_v29 = vcombine.high %v772_v60, %v776_v23  ;;  %v816_v1 = vld [vmem:[#allocation7 + $0x920] sm:$0xff]  ;;  %v813_v2 = vld [vmem:[#allocation7 + $0x908] sm:$0xff] }
 0x115   :  { %3697 = vmatprep.subr.bf16.mxu0 %v4579_v19  ;;  %3861 = vmatprep.subr.bf16.mxu1 %v4581_v20  ;;  %v4629_v19 = vcombine.high %v773_v49, %v777_v28  ;;  %v780_v20 = vld [vmem:[#allocation7 + $0x800] sm:$0xff] }
 0x116   :  { %v820_v23 = vld [vmem:[#allocation7 + $0x940] sm:$0xff] }
 0x118   :  { %3698 = vmatpush1.bf16.msra.mxu0 %v4578_v63  ;;  %3862 = vmatpush1.bf16.msra.mxu1 %v4580_v17  ;;  %v4628_v63 = vcombine.low %v773_v49, %v777_v28  ;;  %v510_v17 = vmax.f32 %v5416_v3, 0.0  ;;  %v824_v49 = vld [vmem:[#allocation7 + $0x960] sm:$0xff]  ;;  %v821_v28 = vld [vmem:[#allocation7 + $0x948] sm:$0xff] }
 0x119   :  { %3699 = vmatprep.subr.bf16.mxu0 %v4587_v50  ;;  %3863 = vmatprep.subr.bf16.mxu1 %v4589_v8  ;;  %v4635_v50 = vcombine.high %v780_v20, %v784_v32  ;;  %v4637_v8 = vcombine.high %v781_v44, %v785_v34 }
 0x11c   :  { %3700 = vmatpush1.bf16.msra.mxu0 %v4586_v45  ;;  %3864 = vmatpush1.bf16.msra.mxu1 %v4588_v48  ;;  %v793_v45 = vld [vmem:[#allocation7 + $0x868] sm:$0xff]  ;;  %v4634_v48 = vcombine.low %v780_v20, %v784_v32  ;;  %v828_v32 = vld [vmem:[#allocation7 + $0x980] sm:$0xff] }
 0x11d   :  { %3701 = vmatprep.subr.bf16.mxu0 %v4595_v13  ;;  %3865 = vmatprep.subr.bf16.mxu1 %v4597_v46  ;;  %v5481_v13 = vpack.c.bf16 %v510_v17, %v510_v17  ;;  %v4636_v46 = vcombine.low %v781_v44, %v785_v34  ;;  %v4645_v3 = vcombine.high %v789_v56, %v793_v45  ;;  %v832_v44 = vld [vmem:[#allocation7 + $0x9a0] sm:$0xff]  ;;  %v829_v34 = vld [vmem:[#allocation7 + $0x988] sm:$0xff] }
 0x120   :  { %3702 = vmatpush1.bf16.msra.mxu0 %v4594_v16  ;;  %3866 = vmatpush1.bf16.msra.mxu1 %v4596_v4  ;;  %v801_v16 = vld [vmem:[#allocation7 + $0x8a8] sm:$0xff]  ;;  %v4642_v4 = vcombine.low %v788_v55, %v792_v42  ;;  %v840_v55 = vld [vmem:[#allocation7 + $0x9e0] sm:$0xff] }
 0x121   :  { %3703 = vmatprep.subr.bf16.mxu0 %v4603_v54  ;;  %3867 = vmatprep.subr.bf16.mxu1 %v4605_v26  ;;  %v4644_v54 = vcombine.low %v789_v56, %v793_v45  ;;  %v4651_v26 = vcombine.high %v796_v52, %v800_v6  ;;  %v4653_v7 = vcombine.high %v797_v43, %v801_v16  ;;  %v837_v42 = vld [vmem:[#allocation7 + $0x9c8] sm:$0xff] }
 0x122   :  { %v841_v56 = vld [vmem:[#allocation7 + $0x9e8] sm:$0xff]  ;;  %v4682_v45 = vcombine.low %v828_v32, %v832_v44 }
 0x124   :  { %3704 = vmatpush1.bf16.msra.mxu0 %v4602_v21  ;;  %3868 = vmatpush1.bf16.msra.mxu1 %v4604_v39  ;;  %v809_v21 = vld [vmem:[#allocation7 + $0x8e8] sm:$0xff]  ;;  %v4650_v39 = vcombine.low %v796_v52, %v800_v6  ;;  %v848_v52 = vld [vmem:[#allocation7 + $0xa20] sm:$0xff] }
 0x125   :  { %3705 = vmatprep.subr.bf16.mxu0 %v4611_v36  ;;  %3869 = vmatprep.subr.bf16.mxu1 %v4613_v58  ;;  %v4652_v36 = vcombine.low %v797_v43, %v801_v16  ;;  %v4659_v58 = vcombine.high %v804_v14, %v808_v25  ;;  %v4661_v61 = vcombine.high %v805_v31, %v809_v21  ;;  %v845_v6 = vld [vmem:[#allocation7 + $0xa08] sm:$0xff] }
 0x126   :  { %v849_v43 = vld [vmem:[#allocation7 + $0xa28] sm:$0xff]  ;;  %v4690_v16 = vcombine.low %v836_v15, %v840_v55 }
 0x128   :  { %3706 = vmatpush1.bf16.msra.mxu0 %v4610_v9  ;;  %3870 = vmatpush1.bf16.msra.mxu1 %v4612_v12  ;;  %v817_v9 = vld [vmem:[#allocation7 + $0x928] sm:$0xff]  ;;  %v4658_v12 = vcombine.low %v804_v14, %v808_v25  ;;  %v856_v14 = vld [vmem:[#allocation7 + $0xa60] sm:$0xff] }
 0x129   :  { %3707 = vmatprep.subr.bf16.mxu0 %v4619_v37  ;;  %3871 = vmatprep.subr.bf16.mxu1 %v4621_v10  ;;  %v4660_v37 = vcombine.low %v805_v31, %v809_v21  ;;  %v4667_v10 = vcombine.high %v812_v0, %v816_v1  ;;  %v4669_v60 = vcombine.high %v813_v2, %v817_v9  ;;  %v853_v25 = vld [vmem:[#allocation7 + $0xa48] sm:$0xff] }
 0x12a   :  { %v857_v31 = vld [vmem:[#allocation7 + $0xa68] sm:$0xff] }
 0x12c   :  { %3708 = vmatpush1.bf16.msra.mxu0 %v4618_v18  ;;  %3872 = vmatpush1.bf16.msra.mxu1 %v4620_v40  ;;  %v825_v18 = vld [vmem:[#allocation7 + $0x968] sm:$0xff]  ;;  %v4666_v40 = vcombine.low %v812_v0, %v816_v1  ;;  %v864_v0 = vld [vmem:[#allocation7 + $0xaa0] sm:$0xff] }
 0x12d   :  { %3709 = vmatprep.subr.bf16.mxu0 %v4627_v29  ;;  %3873 = vmatprep.subr.bf16.mxu1 %v4629_v19  ;;  %v4668_v29 = vcombine.low %v813_v2, %v817_v9  ;;  %v4675_v19 = vcombine.high %v820_v23, %v824_v49  ;;  %v4677_v20 = vcombine.high %v821_v28, %v825_v18  ;;  %v861_v1 = vld [vmem:[#allocation7 + $0xa88] sm:$0xff] }
 0x12e   :  { %v4676_v17 = vcombine.low %v821_v28, %v825_v18  ;;  %v865_v2 = vld [vmem:[#allocation7 + $0xaa8] sm:$0xff] }
 0x12f   :  { %v873_v28 = vld [vmem:[#allocation7 + $0xae8] sm:$0xff] }
 0x130   :  { %3710 = vmatpush1.bf16.msra.mxu0 %v4626_v62  ;;  %3874 = vmatpush1.bf16.msra.mxu1 %v4628_v63  ;;  %v833_v62 = vld [vmem:[#allocation7 + $0x9a8] sm:$0xff]  ;;  %v4674_v63 = vcombine.low %v820_v23, %v824_v49  ;;  %v872_v23 = vld [vmem:[#allocation7 + $0xae0] sm:$0xff] }
 0x131   :  { %3720 = vmatprep.subr.bf16.mxu0 %v4635_v50  ;;  %3884 = vmatprep.subr.bf16.mxu1 %v4637_v8  ;;  %v4683_v50 = vcombine.high %v828_v32, %v832_v44  ;;  %v4685_v8 = vcombine.high %v829_v34, %v833_v62  ;;  %v869_v49 = vld [vmem:[#allocation7 + $0xac8] sm:$0xff]  ;;  %v880_v32 = vld [vmem:[#allocation7 + $0xb20] sm:$0xff] }
 0x132   :  { %v877_v44 = vld [vmem:[#allocation7 + $0xb08] sm:$0xff] }
 0x133   :  { %3712 = vmatmul.mubr.bf16.vlgmr.msra.gmra.mrb[0].mxu0 %v5481_v13  ;;  %3876 = vmatmul.mubr.bf16.vlgmr.msra.gmra.mrb[0].mxu1 %v5481_v13 }
 0x134   :  { %3721 = vmatpush1.bf16.msra.mxu0 %v4634_v48  ;;  %3752 = vmatprep.mubr.bf16.mxu0 %v5483_v47  ;;  %v4684_v48 = vcombine.low %v829_v34, %v833_v62  ;;  %v881_v34 = vld [vmem:[#allocation7 + $0xb28] sm:$0xff] }
 0x135   :  { %3885 = vmatpush1.bf16.msra.mxu1 %v4636_v46  ;;  %3916 = vmatprep.mubr.bf16.mxu1 %v5483_v47  ;;  %v4691_v46 = vcombine.high %v836_v15, %v840_v55  ;;  %v888_v15 = vld [vmem:[#allocation7 + $0xb60] sm:$0xff]  ;;  %v885_v55 = vld [vmem:[#allocation7 + $0xb48] sm:$0xff] }
 0x136   :  { %3722 = vmatprep.subr.bf16.mxu0 %v4643_v51  ;;  %3886 = vmatprep.subr.bf16.mxu1 %v4645_v3  ;;  %v4693_v51 = vcombine.high %v837_v42, %v841_v56  ;;  %v844_v3 = vld [vmem:[#allocation7 + $0xa00] sm:$0xff] }
 0x137   :  { %v4698_v21 = vcombine.low %v844_v3, %v848_v52 }
 0x138   :  { %3723 = vmatpush1.bf16.msra.mxu0 %v4642_v4  ;;  %v4692_v4 = vcombine.low %v837_v42, %v841_v56  ;;  %v889_v42 = vld [vmem:[#allocation7 + $0xb68] sm:$0xff] }
 0x139   :  { %3887 = vmatpush1.bf16.msra.mxu1 %v4644_v54  ;;  %3724 = vmatprep.subr.bf16.mxu0 %v4651_v26  ;;  %v4699_v54 = vcombine.high %v844_v3, %v848_v52  ;;  %v4701_v26 = vcombine.high %v845_v6, %v849_v43  ;;  %v896_v3 = vld [vmem:[#allocation7 + $0xba0] sm:$0xff]  ;;  %v893_v52 = vld [vmem:[#allocation7 + $0xb88] sm:$0xff] }
 0x13a   :  { %3888 = vmatprep.subr.bf16.mxu1 %v4653_v7  ;;  %v852_v7 = vld [vmem:[#allocation7 + $0xa40] sm:$0xff] }
 0x13b   :  { %v4706_v9 = vcombine.low %v852_v7, %v856_v14 }
 0x13c   :  { %3725 = vmatpush1.bf16.msra.mxu0 %v4650_v39  ;;  %v4700_v39 = vcombine.low %v845_v6, %v849_v43  ;;  %v897_v6 = vld [vmem:[#allocation7 + $0xba8] sm:$0xff] }
 0x13d   :  { %3889 = vmatpush1.bf16.msra.mxu1 %v4652_v36  ;;  %3726 = vmatprep.subr.bf16.mxu0 %v4659_v58  ;;  %v4707_v36 = vcombine.high %v852_v7, %v856_v14  ;;  %v4709_v58 = vcombine.high %v853_v25, %v857_v31  ;;  %v904_v7 = vld [vmem:[#allocation7 + $0xbe0] sm:$0xff]  ;;  %v901_v14 = vld [vmem:[#allocation7 + $0xbc8] sm:$0xff] }
 0x13e   :  { %3890 = vmatprep.subr.bf16.mxu1 %v4661_v61  ;;  %v860_v61 = vld [vmem:[#allocation7 + $0xa80] sm:$0xff] }
 0x13f   :  { %v4714_v18 = vcombine.low %v860_v61, %v864_v0 }
 0x140   :  { %3727 = vmatpush1.bf16.msra.mxu0 %v4658_v12  ;;  %v4708_v12 = vcombine.low %v853_v25, %v857_v31  ;;  %v905_v25 = vld [vmem:[#allocation7 + $0xbe8] sm:$0xff] }
 0x141   :  { %3891 = vmatpush1.bf16.msra.mxu1 %v4660_v37  ;;  %3728 = vmatprep.subr.bf16.mxu0 %v4667_v10  ;;  %v4715_v37 = vcombine.high %v860_v61, %v864_v0  ;;  %v4717_v10 = vcombine.high %v861_v1, %v865_v2  ;;  %v912_v61 = vld [vmem:[#allocation7 + $0xc20] sm:$0xff]  ;;  %v909_v0 = vld [vmem:[#allocation7 + $0xc08] sm:$0xff] }
 0x142   :  { %3892 = vmatprep.subr.bf16.mxu1 %v4669_v60  ;;  %v868_v60 = vld [vmem:[#allocation7 + $0xac0] sm:$0xff] }
 0x143   :  { %v4722_v62 = vcombine.low %v868_v60, %v872_v23 }
 0x144   :  { %3729 = vmatpush1.bf16.msra.mxu0 %v4666_v40  ;;  %v4716_v40 = vcombine.low %v861_v1, %v865_v2  ;;  %v913_v1 = vld [vmem:[#allocation7 + $0xc28] sm:$0xff] }
 0x145   :  { %3893 = vmatpush1.bf16.msra.mxu1 %v4668_v29  ;;  %3730 = vmatprep.subr.bf16.mxu0 %v4675_v19  ;;  %v4723_v29 = vcombine.high %v868_v60, %v872_v23  ;;  %v4725_v19 = vcombine.high %v869_v49, %v873_v28  ;;  %v515_v60 = vmax.f32 %v5473_v57, 0.0  ;;  %v916_v23 = vld [vmem:[#allocation7 + $0xc40] sm:$0xff] }
 0x146   :  { %3894 = vmatprep.subr.bf16.mxu1 %v4677_v20  ;;  %v876_v20 = vld [vmem:[#allocation7 + $0xb00] sm:$0xff] }
 0x147   :  { %v4730_v56 = vcombine.low %v876_v20, %v880_v32 }
 0x148   :  { %3731 = vmatpush1.bf16.msra.mxu0 %v4674_v63  ;;  %v4724_v63 = vcombine.low %v869_v49, %v873_v28  ;;  %v920_v49 = vld [vmem:[#allocation7 + $0xc60] sm:$0xff] }
 0x149   :  { %3895 = vmatpush1.bf16.msra.mxu1 %v4676_v17  ;;  %3732 = vmatprep.subr.bf16.mxu0 %v4683_v50  ;;  %v4731_v17 = vcombine.high %v876_v20, %v880_v32  ;;  %v4733_v50 = vcombine.high %v877_v44, %v881_v34  ;;  %v4771_v20 = vcombine.high %v916_v23, %v920_v49  ;;  %v924_v32 = vld [vmem:[#allocation7 + $0xc80] sm:$0xff] }
 0x14a   :  { %3896 = vmatprep.subr.bf16.mxu1 %v4685_v8  ;;  %v884_v8 = vld [vmem:[#allocation7 + $0xb40] sm:$0xff] }
 0x14b   :  { %v4738_v43 = vcombine.low %v884_v8, %v888_v15 }
 0x14c   :  { %3733 = vmatpush1.bf16.msra.mxu0 %v4682_v45  ;;  %v4732_v45 = vcombine.low %v877_v44, %v881_v34  ;;  %v5494_v44 = vpack.c.bf16 %v515_v60, %v515_v60  ;;  %v925_v34 = vld [vmem:[#allocation7 + $0xc88] sm:$0xff]  ;;  %v964_v60 = vld [vmem:[#allocation7 + $0xdc0] sm:$0xff] }
 0x14d   :  { %3897 = vmatpush1.bf16.msra.mxu1 %v4684_v48  ;;  %3734 = vmatprep.subr.bf16.mxu0 %v4691_v46  ;;  %v4739_v48 = vcombine.high %v884_v8, %v888_v15  ;;  %v4741_v46 = vcombine.high %v885_v55, %v889_v42  ;;  %v932_v15 = vld [vmem:[#allocation7 + $0xcc0] sm:$0xff] }
 0x14e   :  { %3898 = vmatprep.subr.bf16.mxu1 %v4693_v51  ;;  %v892_v51 = vld [vmem:[#allocation7 + $0xb80] sm:$0xff] }
 0x14f   :  { %v4746_v31 = vcombine.low %v892_v51, %v896_v3 }
 0x150   :  { %3735 = vmatpush1.bf16.msra.mxu0 %v4690_v16  ;;  %v4740_v16 = vcombine.low %v885_v55, %v889_v42  ;;  %v936_v55 = vld [vmem:[#allocation7 + $0xce0] sm:$0xff]  ;;  %v933_v42 = vld [vmem:[#allocation7 + $0xcc8] sm:$0xff] }
 0x151   :  { %3899 = vmatpush1.bf16.msra.mxu1 %v4692_v4  ;;  %3736 = vmatprep.subr.bf16.mxu0 %v4699_v54  ;;  %v4747_v4 = vcombine.high %v892_v51, %v896_v3  ;;  %v4749_v54 = vcombine.high %v893_v52, %v897_v6  ;;  %v940_v3 = vld [vmem:[#allocation7 + $0xd00] sm:$0xff] }
 0x152   :  { %3900 = vmatprep.subr.bf16.mxu1 %v4701_v26  ;;  %v900_v26 = vld [vmem:[#allocation7 + $0xbc0] sm:$0xff] }
 0x153   :  { %v4754_v2 = vcombine.low %v900_v26, %v904_v7 }
 0x154   :  { %3737 = vmatpush1.bf16.msra.mxu0 %v4698_v21  ;;  %v4748_v21 = vcombine.low %v893_v52, %v897_v6  ;;  %v944_v52 = vld [vmem:[#allocation7 + $0xd20] sm:$0xff]  ;;  %v941_v6 = vld [vmem:[#allocation7 + $0xd08] sm:$0xff] }
 0x155   :  { %3901 = vmatpush1.bf16.msra.mxu1 %v4700_v39  ;;  %3738 = vmatprep.subr.bf16.mxu0 %v4707_v36  ;;  %v4755_v39 = vcombine.high %v900_v26, %v904_v7  ;;  %v4757_v36 = vcombine.high %v901_v14, %v905_v25  ;;  %v948_v7 = vld [vmem:[#allocation7 + $0xd40] sm:$0xff] }
 0x156   :  { %3902 = vmatprep.subr.bf16.mxu1 %v4709_v58  ;;  %v908_v58 = vld [vmem:[#allocation7 + $0xc00] sm:$0xff] }
 0x157   :  { %v4762_v28 = vcombine.low %v908_v58, %v912_v61 }
 0x158   :  { %3739 = vmatpush1.bf16.msra.mxu0 %v4706_v9  ;;  %v4756_v9 = vcombine.low %v901_v14, %v905_v25  ;;  %v952_v14 = vld [vmem:[#allocation7 + $0xd60] sm:$0xff]  ;;  %v949_v25 = vld [vmem:[#allocation7 + $0xd48] sm:$0xff] }
 0x159   :  { %3903 = vmatpush1.bf16.msra.mxu1 %v4708_v12  ;;  %3740 = vmatprep.subr.bf16.mxu0 %v4715_v37  ;;  %v512_v12 = vmax.f32 %v5464_v5, 0.0  ;;  %v4763_v37 = vcombine.high %v908_v58, %v912_v61  ;;  %v928_v5 = vld [vmem:[#allocation7 + $0xca0] sm:$0xff] }
 0x15a   :  { %3904 = vmatprep.subr.bf16.mxu1 %v4717_v10  ;;  %v4765_v10 = vcombine.high %v909_v0, %v913_v1  ;;  %v956_v61 = vld [vmem:[#allocation7 + $0xd80] sm:$0xff] }
 0x15c   :  { %3741 = vmatpush1.bf16.msra.mxu0 %v4714_v18  ;;  %v917_v18 = vld [vmem:[#allocation7 + $0xc48] sm:$0xff] }
 0x15d   :  { %3905 = vmatpush1.bf16.msra.mxu1 %v4716_v40  ;;  %3742 = vmatprep.subr.bf16.mxu0 %v4723_v29  ;;  %v921_v40 = vld [vmem:[#allocation7 + $0xc68] sm:$0xff]  ;;  %v5491_v29 = vpack.c.bf16 %v512_v12, %v512_v12 }
 0x15e   :  { %3906 = vmatprep.subr.bf16.mxu1 %v4725_v19  ;;  %v4764_v19 = vcombine.low %v909_v0, %v913_v1  ;;  %v4773_v57 = vcombine.high %v917_v18, %v921_v40  ;;  %v960_v0 = vld [vmem:[#allocation7 + $0xda0] sm:$0xff]  ;;  %v957_v1 = vld [vmem:[#allocation7 + $0xd88] sm:$0xff] }
 0x160   :  { %3743 = vmatpush1.bf16.msra.mxu0 %v4722_v62  ;;  %v929_v62 = vld [vmem:[#allocation7 + $0xca8] sm:$0xff] }
 0x161   :  { %3907 = vmatpush1.bf16.msra.mxu1 %v4724_v63  ;;  %3744 = vmatprep.subr.bf16.mxu0 %v4731_v17  ;;  %v4770_v63 = vcombine.low %v916_v23, %v920_v49  ;;  %v4772_v17 = vcombine.low %v917_v18, %v921_v40  ;;  %v4781_v8 = vcombine.high %v925_v34, %v929_v62  ;;  %v968_v23 = vld [vmem:[#allocation7 + $0xde0] sm:$0xff]  ;;  %v965_v49 = vld [vmem:[#allocation7 + $0xdc8] sm:$0xff] }
 0x162   :  { %3908 = vmatprep.subr.bf16.mxu1 %v4733_v50  ;;  %v4779_v50 = vcombine.high %v924_v32, %v928_v5  ;;  %v4810_v18 = vcombine.low %v956_v61, %v960_v0 }
 0x164   :  { %3745 = vmatpush1.bf16.msra.mxu0 %v4730_v56  ;;  %v937_v56 = vld [vmem:[#allocation7 + $0xce8] sm:$0xff] }
 0x165   :  { %3909 = vmatpush1.bf16.msra.mxu1 %v4732_v45  ;;  %3746 = vmatprep.subr.bf16.mxu0 %v4739_v48  ;;  %v4778_v45 = vcombine.low %v924_v32, %v928_v5  ;;  %v4780_v48 = vcombine.low %v925_v34, %v929_v62  ;;  %v4789_v51 = vcombine.high %v933_v42, %v937_v56  ;;  %v972_v32 = vld [vmem:[#allocation7 + $0xe00] sm:$0xff]  ;;  %v977_v34 = vld [vmem:[#allocation7 + $0xe28] sm:$0xff] }
 0x166   :  { %3910 = vmatprep.subr.bf16.mxu1 %v4741_v46  ;;  %v4787_v46 = vcombine.high %v932_v15, %v936_v55  ;;  %v976_v5 = vld [vmem:[#allocation7 + $0xe20] sm:$0xff]  ;;  %v4818_v62 = vcombine.low %v964_v60, %v968_v23 }
 0x168   :  { %3747 = vmatpush1.bf16.msra.mxu0 %v4738_v43  ;;  %v945_v43 = vld [vmem:[#allocation7 + $0xd28] sm:$0xff] }
 0x169   :  { %3911 = vmatpush1.bf16.msra.mxu1 %v4740_v16  ;;  %3748 = vmatprep.subr.bf16.mxu0 %v4747_v4  ;;  %v4786_v16 = vcombine.low %v932_v15, %v936_v55  ;;  %v4788_v4 = vcombine.low %v933_v42, %v937_v56  ;;  %v4797_v26 = vcombine.high %v941_v6, %v945_v43  ;;  %v984_v15 = vld [vmem:[#allocation7 + $0xe60] sm:$0xff]  ;;  %v981_v55 = vld [vmem:[#allocation7 + $0xe48] sm:$0xff] }
 0x16a   :  { %3912 = vmatprep.subr.bf16.mxu1 %v4749_v54  ;;  %v4795_v54 = vcombine.high %v940_v3, %v944_v52  ;;  %v985_v42 = vld [vmem:[#allocation7 + $0xe68] sm:$0xff]  ;;  %v4826_v56 = vcombine.low %v972_v32, %v976_v5 }
 0x16c   :  { %3749 = vmatpush1.bf16.msra.mxu0 %v4746_v31  ;;  %v953_v31 = vld [vmem:[#allocation7 + $0xd68] sm:$0xff] }
 0x16d   :  { %3913 = vmatpush1.bf16.msra.mxu1 %v4748_v21  ;;  %3750 = vmatprep.subr.bf16.mxu0 %v4755_v39  ;;  %v4794_v21 = vcombine.low %v940_v3, %v944_v52  ;;  %v4796_v39 = vcombine.low %v941_v6, %v945_v43  ;;  %v4805_v58 = vcombine.high %v949_v25, %v953_v31  ;;  %v992_v3 = vld [vmem:[#allocation7 + $0xea0] sm:$0xff]  ;;  %v989_v52 = vld [vmem:[#allocation7 + $0xe88] sm:$0xff] }
 0x16e   :  { %3914 = vmatprep.subr.bf16.mxu1 %v4757_v36  ;;  %v4803_v36 = vcombine.high %v948_v7, %v952_v14  ;;  %v4804_v12 = vcombine.low %v949_v25, %v953_v31  ;;  %v993_v6 = vld [vmem:[#allocation7 + $0xea8] sm:$0xff] }
 0x16f   :  { %v1001_v25 = vld [vmem:[#allocation7 + $0xee8] sm:$0xff] }
 0x170   :  { %3751 = vmatpush1.bf16.msra.mxu0 %v4754_v2  ;;  %v961_v2 = vld [vmem:[#allocation7 + $0xda8] sm:$0xff] }
 0x171   :  { %3915 = vmatpush1.bf16.msra.mxu1 %v4756_v9  ;;  %3761 = vmatprep.subr.bf16.mxu0 %v4763_v37  ;;  %v4802_v9 = vcombine.low %v948_v7, %v952_v14  ;;  %v4811_v37 = vcombine.high %v956_v61, %v960_v0  ;;  %v4812_v40 = vcombine.low %v957_v1, %v961_v2  ;;  %v1000_v7 = vld [vmem:[#allocation7 + $0xee0] sm:$0xff]  ;;  %v997_v14 = vld [vmem:[#allocation7 + $0xec8] sm:$0xff] }
 0x172   :  { %3925 = vmatprep.subr.bf16.mxu1 %v4765_v10  ;;  %v4813_v10 = vcombine.high %v957_v1, %v961_v2  ;;  %v1008_v61 = vld [vmem:[#allocation7 + $0xf20] sm:$0xff]  ;;  %v1005_v0 = vld [vmem:[#allocation7 + $0xf08] sm:$0xff] }
 0x173   :  { %3753 = vmatmul.mubr.bf16.vlgmr.msra.gmra.mrb[0].mxu0 %v5491_v29  ;;  %v1009_v1 = vld [vmem:[#allocation7 + $0xf28] sm:$0xff] }
 0x174   :  { %3917 = vmatmul.mubr.bf16.vlgmr.msra.gmra.mrb[0].mxu1 %v5491_v29  ;;  %3762 = vmatpush1.bf16.msra.mxu0 %v4762_v28  ;;  %v969_v28 = vld [vmem:[#allocation7 + $0xde8] sm:$0xff] }
 0x175   :  { %3793 = vmatprep.mubr.bf16.mxu0 %v5494_v44  ;;  %3926 = vmatpush1.bf16.msra.mxu1 %v4764_v19  ;;  %v4819_v19 = vcombine.high %v964_v60, %v968_v23  ;;  %v1016_v60 = vld [vmem:[#allocation7 + $0xf60] sm:$0xff]  ;;  %v1013_v23 = vld [vmem:[#allocation7 + $0xf48] sm:$0xff] }
 0x176   :  { %3957 = vmatprep.mubr.bf16.mxu1 %v5494_v44  ;;  %3763 = vmatprep.subr.bf16.mxu0 %v4771_v20  ;;  %v4821_v20 = vcombine.high %v965_v49, %v969_v28 }
 0x177   :  { %3927 = vmatprep.subr.bf16.mxu1 %v4773_v57  ;;  %v973_v57 = vld [vmem:[#allocation7 + $0xe08] sm:$0xff] }
 0x178   :  { %3764 = vmatpush1.bf16.msra.mxu0 %v4770_v63  ;;  %v4820_v63 = vcombine.low %v965_v49, %v969_v28  ;;  %v1017_v49 = vld [vmem:[#allocation7 + $0xf68] sm:$0xff] }
 0x179   :  { %3928 = vmatpush1.bf16.msra.mxu1 %v4772_v17  ;;  %3765 = vmatprep.subr.bf16.mxu0 %v4779_v50  ;;  %v4827_v17 = vcombine.high %v972_v32, %v976_v5  ;;  %v4829_v50 = vcombine.high %v973_v57, %v977_v34  ;;  %v1024_v32 = vld [vmem:[#allocation7 + $0xfa0] sm:$0xff]  ;;  %v1021_v5 = vld [vmem:[#allocation7 + $0xf88] sm:$0xff] }
 0x17a   :  { %3929 = vmatprep.subr.bf16.mxu1 %v4781_v8  ;;  %v980_v8 = vld [vmem:[#allocation7 + $0xe40] sm:$0xff] }
 0x17b   :  { %v4834_v43 = vcombine.low %v980_v8, %v984_v15 }
 0x17c   :  { %3766 = vmatpush1.bf16.msra.mxu0 %v4778_v45  ;;  %v4828_v45 = vcombine.low %v973_v57, %v977_v34  ;;  %v1025_v57 = vld [vmem:[#allocation7 + $0xfa8] sm:$0xff] }
 0x17d   :  { %3930 = vmatpush1.bf16.msra.mxu1 %v4780_v48  ;;  %3767 = vmatprep.subr.bf16.mxu0 %v4787_v46  ;;  %v4835_v48 = vcombine.high %v980_v8, %v984_v15  ;;  %v4837_v46 = vcombine.high %v981_v55, %v985_v42  ;;  %v1032_v8 = vld [vmem:[#allocation7 + $0xfe0] sm:$0xff]  ;;  %v1029_v15 = vld [vmem:[#allocation7 + $0xfc8] sm:$0xff] }
 0x17e   :  { %3931 = vmatprep.subr.bf16.mxu1 %v4789_v51  ;;  %v988_v51 = vld [vmem:[#allocation7 + $0xe80] sm:$0xff] }
 0x17f   :  { %v4842_v31 = vcombine.low %v988_v51, %v992_v3 }
 0x180   :  { %3768 = vmatpush1.bf16.msra.mxu0 %v4786_v16  ;;  %v4836_v16 = vcombine.low %v981_v55, %v985_v42  ;;  %v1033_v55 = vld [vmem:[#allocation7 + $0xfe8] sm:$0xff] }
 0x181   :  { %3932 = vmatpush1.bf16.msra.mxu1 %v4788_v4  ;;  %3769 = vmatprep.subr.bf16.mxu0 %v4795_v54  ;;  %v4843_v4 = vcombine.high %v988_v51, %v992_v3  ;;  %v4845_v54 = vcombine.high %v989_v52, %v993_v6  ;;  %v530_v51 = vld [vmem:[#allocation7 + $0x30] sm:$0xff]  ;;  %v527_v3 = vld [vmem:[#allocation7 + $0x18] sm:$0xff] }
 0x182   :  { %3933 = vmatprep.subr.bf16.mxu1 %v4797_v26  ;;  %v996_v26 = vld [vmem:[#allocation7 + $0xec0] sm:$0xff] }
 0x183   :  { %v4850_v2 = vcombine.low %v996_v26, %v1000_v7 }
 0x184   :  { %3770 = vmatpush1.bf16.msra.mxu0 %v4794_v21  ;;  %v4844_v21 = vcombine.low %v989_v52, %v993_v6  ;;  %v531_v52 = vld [vmem:[#allocation7 + $0x38] sm:$0xff] }
 0x185   :  { %3934 = vmatpush1.bf16.msra.mxu1 %v4796_v39  ;;  %3771 = vmatprep.subr.bf16.mxu0 %v4803_v36  ;;  %v4851_v39 = vcombine.high %v996_v26, %v1000_v7  ;;  %v4853_v36 = vcombine.high %v997_v14, %v1001_v25  ;;  %v534_v26 = vld [vmem:[#allocation7 + $0x50] sm:$0xff] }
 0x186   :  { %3935 = vmatprep.subr.bf16.mxu1 %v4805_v58  ;;  %v1004_v58 = vld [vmem:[#allocation7 + $0xf00] sm:$0xff]  ;;  %v538_v7 = vld [vmem:[#allocation7 + $0x70] sm:$0xff] }
 0x187   :  { %v4858_v28 = vcombine.low %v1004_v58, %v1008_v61 }
 0x188   :  { %3772 = vmatpush1.bf16.msra.mxu0 %v4802_v9  ;;  %v4852_v9 = vcombine.low %v997_v14, %v1001_v25  ;;  %v535_v25 = vld [vmem:[#allocation7 + $0x58] sm:$0xff] }
 0x189   :  { %3936 = vmatpush1.bf16.msra.mxu1 %v4804_v12  ;;  %3773 = vmatprep.subr.bf16.mxu0 %v4811_v37  ;;  %v4859_v12 = vcombine.high %v1004_v58, %v1008_v61  ;;  %v4861_v37 = vcombine.high %v1005_v0, %v1009_v1  ;;  %v542_v58 = vld [vmem:[#allocation7 + $0x90] sm:$0xff] }
 0x18a   :  { %3937 = vmatprep.subr.bf16.mxu1 %v4813_v10  ;;  %v1012_v10 = vld [vmem:[#allocation7 + $0xf40] sm:$0xff]  ;;  %v546_v61 = vld [vmem:[#allocation7 + $0xb0] sm:$0xff] }
 0x18b   :  { %v4866_v34 = vcombine.low %v1012_v10, %v1016_v60 }
 0x18c   :  { %3774 = vmatpush1.bf16.msra.mxu0 %v4810_v18  ;;  %v4860_v18 = vcombine.low %v1005_v0, %v1009_v1  ;;  %v543_v0 = vld [vmem:[#allocation7 + $0x98] sm:$0xff] }
 0x18d   :  { %3938 = vmatpush1.bf16.msra.mxu1 %v4812_v40  ;;  %3775 = vmatprep.subr.bf16.mxu0 %v4819_v19  ;;  %v4867_v40 = vcombine.high %v1012_v10, %v1016_v60  ;;  %v4869_v19 = vcombine.high %v1013_v23, %v1017_v49  ;;  %v547_v1 = vld [vmem:[#allocation7 + $0xb8] sm:$0xff]  ;;  %v550_v10 = vld [vmem:[#allocation7 + $0xd0] sm:$0xff] }
 0x18e   :  { %3939 = vmatprep.subr.bf16.mxu1 %v4821_v20  ;;  %v1020_v20 = vld [vmem:[#allocation7 + $0xf80] sm:$0xff]  ;;  %v554_v60 = vld [vmem:[#allocation7 + $0xf0] sm:$0xff] }
 0x18f   :  { %v4874_v42 = vcombine.low %v1020_v20, %v1024_v32 }
 0x190   :  { %3776 = vmatpush1.bf16.msra.mxu0 %v4818_v62  ;;  %v4868_v62 = vcombine.low %v1013_v23, %v1017_v49  ;;  %v551_v23 = vld [vmem:[#allocation7 + $0xd8] sm:$0xff] }
 0x191   :  { %3940 = vmatpush1.bf16.msra.mxu1 %v4820_v63  ;;  %3777 = vmatprep.subr.bf16.mxu0 %v4827_v17  ;;  %v4875_v63 = vcombine.high %v1020_v20, %v1024_v32  ;;  %v4877_v17 = vcombine.high %v1021_v5, %v1025_v57  ;;  %v555_v49 = vld [vmem:[#allocation7 + $0xf8] sm:$0xff]  ;;  %v558_v20 = vld [vmem:[#allocation7 + $0x110] sm:$0xff] }
 0x192   :  { %3941 = vmatprep.subr.bf16.mxu1 %v4829_v50  ;;  %v1028_v50 = vld [vmem:[#allocation7 + $0xfc0] sm:$0xff]  ;;  %v562_v32 = vld [vmem:[#allocation7 + $0x130] sm:$0xff] }
 0x193   :  { %v4882_v6 = vcombine.low %v1028_v50, %v1032_v8 }
 0x194   :  { %3778 = vmatpush1.bf16.msra.mxu0 %v4826_v56  ;;  %v4876_v56 = vcombine.low %v1021_v5, %v1025_v57  ;;  %v559_v5 = vld [vmem:[#allocation7 + $0x118] sm:$0xff] }
 0x195   :  { %3942 = vmatpush1.bf16.msra.mxu1 %v4828_v45  ;;  %3779 = vmatprep.subr.bf16.mxu0 %v4835_v48  ;;  %v4883_v45 = vcombine.high %v1028_v50, %v1032_v8  ;;  %v4885_v48 = vcombine.high %v1029_v15, %v1033_v55  ;;  %v563_v57 = vld [vmem:[#allocation7 + $0x138] sm:$0xff]  ;;  %v570_v50 = vld [vmem:[#allocation7 + $0x170] sm:$0xff] }
 0x196   :  { %3943 = vmatprep.subr.bf16.mxu1 %v4837_v46  ;;  %v526_v46 = vld [vmem:[#allocation7 + $0x10] sm:$0xff]  ;;  %v567_v8 = vld [vmem:[#allocation7 + $0x158] sm:$0xff] }
 0x197   :  { %v4382_v14 = vcombine.low %v526_v46, %v530_v51 }
 0x198   :  { %3780 = vmatpush1.bf16.msra.mxu0 %v4834_v43  ;;  %v4884_v43 = vcombine.low %v1029_v15, %v1033_v55  ;;  %v571_v15 = vld [vmem:[#allocation7 + $0x178] sm:$0xff]  ;;  %v4414_v55 = vcombine.low %v558_v20, %v562_v32 }
 0x199   :  { %3944 = vmatpush1.bf16.msra.mxu1 %v4836_v16  ;;  %3781 = vmatprep.subr.bf16.mxu0 %v4843_v4  ;;  %v514_v16 = vmax.f32 %v5477_v30, 0.0  ;;  %v4383_v4 = vcombine.high %v526_v46, %v530_v51  ;;  %v578_v46 = vld [vmem:[#allocation7 + $0x1b0] sm:$0xff]  ;;  %v575_v51 = vld [vmem:[#allocation7 + $0x198] sm:$0xff] }
 0x19a   :  { %3945 = vmatprep.subr.bf16.mxu1 %v4845_v54  ;;  %v4385_v54 = vcombine.high %v527_v3, %v531_v52 }
 0x19c   :  { %3782 = vmatpush1.bf16.msra.mxu0 %v4842_v31  ;;  %v539_v31 = vld [vmem:[#allocation7 + $0x78] sm:$0xff] }
 0x19d   :  { %3946 = vmatpush1.bf16.msra.mxu1 %v4844_v21  ;;  %3783 = vmatprep.subr.bf16.mxu0 %v4851_v39  ;;  %v5500_v21 = vpack.c.bf16 %v514_v16, %v514_v16  ;;  %v4384_v39 = vcombine.low %v527_v3, %v531_v52  ;;  %v4393_v30 = vcombine.high %v535_v25, %v539_v31  ;;  %v579_v3 = vld [vmem:[#allocation7 + $0x1b8] sm:$0xff] }
 0x19e   :  { %3947 = vmatprep.subr.bf16.mxu1 %v4853_v36  ;;  %v4391_v36 = vcombine.high %v534_v26, %v538_v7  ;;  %v4433_v16 = vcombine.high %v575_v51, %v579_v3 }
 0x1a0   :  { %3784 = vmatpush1.bf16.msra.mxu0 %v4850_v2  ;;  %v4390_v2 = vcombine.low %v534_v26, %v538_v7  ;;  %v583_v26 = vld [vmem:[#allocation7 + $0x1d8] sm:$0xff] }
 0x1a1   :  { %3948 = vmatpush1.bf16.msra.mxu1 %v4852_v9  ;;  %3785 = vmatprep.subr.bf16.mxu0 %v4859_v12  ;;  %v4392_v9 = vcombine.low %v535_v25, %v539_v31  ;;  %v4399_v12 = vcombine.high %v542_v58, %v546_v61  ;;  %v587_v7 = vld [vmem:[#allocation7 + $0x1f8] sm:$0xff]  ;;  %v4432_v25 = vcombine.low %v575_v51, %v579_v3 }
 0x1a2   :  { %3949 = vmatprep.subr.bf16.mxu1 %v4861_v37  ;;  %v4401_v37 = vcombine.high %v543_v0, %v547_v1 }
 0x1a4   :  { %3786 = vmatpush1.bf16.msra.mxu0 %v4858_v28  ;;  %v4398_v28 = vcombine.low %v542_v58, %v546_v61  ;;  %v594_v58 = vld [vmem:[#allocation7 + $0x230] sm:$0xff]  ;;  %v591_v61 = vld [vmem:[#allocation7 + $0x218] sm:$0xff] }
 0x1a5   :  { %3950 = vmatpush1.bf16.msra.mxu1 %v4860_v18  ;;  %3787 = vmatprep.subr.bf16.mxu0 %v4867_v40  ;;  %v4400_v18 = vcombine.low %v543_v0, %v547_v1  ;;  %v4407_v40 = vcombine.high %v550_v10, %v554_v60  ;;  %v4440_v1 = vcombine.low %v583_v26, %v587_v7 }
 0x1a6   :  { %3951 = vmatprep.subr.bf16.mxu1 %v4869_v19  ;;  %v4409_v19 = vcombine.high %v551_v23, %v555_v49 }
 0x1a8   :  { %3788 = vmatpush1.bf16.msra.mxu0 %v4866_v34  ;;  %v4408_v34 = vcombine.low %v551_v23, %v555_v49 }
 0x1a9   :  { %3952 = vmatpush1.bf16.msra.mxu1 %v4868_v62  ;;  %3789 = vmatprep.subr.bf16.mxu0 %v4875_v63  ;;  %v4415_v62 = vcombine.high %v558_v20, %v562_v32  ;;  %v4417_v63 = vcombine.high %v559_v5, %v563_v57  ;;  %v607_v20 = vld [vmem:[#allocation7 + $0x298] sm:$0xff] }
 0x1aa   :  { %3953 = vmatprep.subr.bf16.mxu1 %v4877_v17  ;;  %v566_v17 = vld [vmem:[#allocation7 + $0x150] sm:$0xff]  ;;  %v611_v32 = vld [vmem:[#allocation7 + $0x2b8] sm:$0xff] }
 0x1ab   :  { %v4422_v52 = vcombine.low %v566_v17, %v570_v50 }
 0x1ac   :  { %3790 = vmatpush1.bf16.msra.mxu0 %v4874_v42  ;;  %v4416_v42 = vcombine.low %v559_v5, %v563_v57 }
 0x1ad   :  { %3954 = vmatpush1.bf16.msra.mxu1 %v4876_v56  ;;  %3791 = vmatprep.subr.bf16.mxu0 %v4883_v45  ;;  %v4423_v56 = vcombine.high %v566_v17, %v570_v50  ;;  %v4425_v45 = vcombine.high %v567_v8, %v571_v15  ;;  %v615_v17 = vld [vmem:[#allocation7 + $0x2d8] sm:$0xff] }
 0x1ae   :  { %3955 = vmatprep.subr.bf16.mxu1 %v4885_v48  ;;  %v574_v48 = vld [vmem:[#allocation7 + $0x190] sm:$0xff]  ;;  %v619_v50 = vld [vmem:[#allocation7 + $0x2f8] sm:$0xff] }
 0x1af   :  { %v4472_v3 = vcombine.low %v615_v17, %v619_v50 }
 0x1b0   :  { %3792 = vmatpush1.bf16.msra.mxu0 %v4882_v6  ;;  %v4424_v6 = vcombine.low %v567_v8, %v571_v15  ;;  %v4464_v15 = vcombine.low %v607_v20, %v611_v32 }
 0x1b1   :  { %3956 = vmatpush1.bf16.msra.mxu1 %v4884_v43  ;;  %3966 = vmatprep.subr.bf16.mxu0 %v4383_v4  ;;  %v4431_v43 = vcombine.high %v574_v48, %v578_v46  ;;  %v582_v4 = vld [vmem:[#allocation7 + $0x1d0] sm:$0xff] }
 0x1b2   :  { %4130 = vmatprep.subr.bf16.mxu1 %v4385_v54  ;;  %v586_v54 = vld [vmem:[#allocation7 + $0x1f0] sm:$0xff] }
 0x1b3   :  { %3794 = vmatmul.mubr.bf16.vlgmr.msra.gmra.mrb[0].mxu0 %v5500_v21  ;;  %v4439_v31 = vcombine.high %v582_v4, %v586_v54  ;;  %v4438_v0 = vcombine.low %v582_v4, %v586_v54  ;;  %v631_v4 = vld [vmem:[#allocation7 + $0x358] sm:$0xff] }
 0x1b4   :  { %3958 = vmatmul.mubr.bf16.vlgmr.msra.gmra.mrb[0].mxu1 %v5500_v21  ;;  %3967 = vmatpush1.bf16.msra.mxu0 %v4382_v14  ;;  %v4430_v14 = vcombine.low %v574_v48, %v578_v46  ;;  %v623_v48 = vld [vmem:[#allocation7 + $0x318] sm:$0xff] }
 0x1b5   :  { %3998 = vmatprep.mubr.bf16.mxu0 %v5427_v11  ;;  %4131 = vmatpush1.bf16.msra.mxu1 %v4384_v39  ;;  %v4441_v39 = vcombine.high %v583_v26, %v587_v7  ;;  %v627_v46 = vld [vmem:[#allocation7 + $0x338] sm:$0xff] }
 0x1b6   :  { %4162 = vmatprep.mubr.bf16.mxu1 %v5427_v11  ;;  %3968 = vmatprep.subr.bf16.mxu0 %v4391_v36  ;;  %v4406_v11 = vcombine.low %v550_v10, %v554_v60  ;;  %v590_v36 = vld [vmem:[#allocation7 + $0x210] sm:$0xff]  ;;  %v599_v10 = vld [vmem:[#allocation7 + $0x258] sm:$0xff]  ;;  %v4480_v7 = vcombine.low %v623_v48, %v627_v46 }
 0x1b7   :  { %4132 = vmatprep.subr.bf16.mxu1 %v4393_v30  ;;  %v595_v30 = vld [vmem:[#allocation7 + $0x238] sm:$0xff]  ;;  %v4446_v23 = vcombine.low %v590_v36, %v594_v58 }
 0x1b8   :  { %3969 = vmatpush1.bf16.msra.mxu0 %v4390_v2  ;;  %v4447_v2 = vcombine.high %v590_v36, %v594_v58  ;;  %v603_v60 = vld [vmem:[#allocation7 + $0x278] sm:$0xff]  ;;  %v4448_v49 = vcombine.low %v591_v61, %v595_v30 }
 0x1b9   :  { %4133 = vmatpush1.bf16.msra.mxu1 %v4392_v9  ;;  %3970 = vmatprep.subr.bf16.mxu0 %v4399_v12  ;;  %v4449_v9 = vcombine.high %v591_v61, %v595_v30  ;;  %v598_v12 = vld [vmem:[#allocation7 + $0x250] sm:$0xff]  ;;  %v4456_v57 = vcombine.low %v599_v10, %v603_v60  ;;  %v635_v54 = vld [vmem:[#allocation7 + $0x378] sm:$0xff] }
 0x1ba   :  { %4134 = vmatprep.subr.bf16.mxu1 %v4401_v37  ;;  %v602_v37 = vld [vmem:[#allocation7 + $0x270] sm:$0xff]  ;;  %v639_v36 = vld [vmem:[#allocation7 + $0x398] sm:$0xff]  ;;  %v4488_v30 = vcombine.low %v631_v4, %v635_v54 }
 0x1bb   :  { %v4454_v5 = vcombine.low %v598_v12, %v602_v37  ;;  %v643_v58 = vld [vmem:[#allocation7 + $0x3b8] sm:$0xff] }
 0x1bc   :  { %3971 = vmatpush1.bf16.msra.mxu0 %v4398_v28  ;;  %v4455_v28 = vcombine.high %v598_v12, %v602_v37  ;;  %v647_v12 = vld [vmem:[#allocation7 + $0x3d8] sm:$0xff] }
 0x1bd   :  { %4135 = vmatpush1.bf16.msra.mxu1 %v4400_v18  ;;  %3972 = vmatprep.subr.bf16.mxu0 %v4407_v40  ;;  %v4457_v18 = vcombine.high %v599_v10, %v603_v60  ;;  %v606_v40 = vld [vmem:[#allocation7 + $0x290] sm:$0xff]  ;;  %v651_v37 = vld [vmem:[#allocation7 + $0x3f8] sm:$0xff]  ;;  %v4496_v60 = vcombine.low %v639_v36, %v643_v58 }
 0x1be   :  { %4136 = vmatprep.subr.bf16.mxu1 %v4409_v19  ;;  %v610_v19 = vld [vmem:[#allocation7 + $0x2b0] sm:$0xff] }
 0x1bf   :  { %v4462_v8 = vcombine.low %v606_v40, %v610_v19 }
 0x1c0   :  { %3973 = vmatpush1.bf16.msra.mxu0 %v4406_v11  ;;  %v4463_v11 = vcombine.high %v606_v40, %v610_v19  ;;  %v655_v40 = vld [vmem:[#allocation7 + $0x418] sm:$0xff] }
 0x1c1   :  { %4137 = vmatpush1.bf16.msra.mxu1 %v4408_v34  ;;  %3974 = vmatprep.subr.bf16.mxu0 %v4415_v62  ;;  %v4465_v34 = vcombine.high %v607_v20, %v611_v32  ;;  %v614_v62 = vld [vmem:[#allocation7 + $0x2d0] sm:$0xff]  ;;  %v659_v19 = vld [vmem:[#allocation7 + $0x438] sm:$0xff]  ;;  %v4504_v32 = vcombine.low %v647_v12, %v651_v37 }
 0x1c2   :  { %4138 = vmatprep.subr.bf16.mxu1 %v4417_v63  ;;  %v618_v63 = vld [vmem:[#allocation7 + $0x2f0] sm:$0xff] }
 0x1c3   :  { %v4470_v51 = vcombine.low %v614_v62, %v618_v63 }
 0x1c4   :  { %3975 = vmatpush1.bf16.msra.mxu0 %v4414_v55  ;;  %v4471_v55 = vcombine.high %v614_v62, %v618_v63  ;;  %v663_v63 = vld [vmem:[#allocation7 + $0x458] sm:$0xff] }
 0x1c5   :  { %4139 = vmatpush1.bf16.msra.mxu1 %v4416_v42  ;;  %3976 = vmatprep.subr.bf16.mxu0 %v4423_v56  ;;  %v4473_v42 = vcombine.high %v615_v17, %v619_v50  ;;  %v622_v56 = vld [vmem:[#allocation7 + $0x310] sm:$0xff]  ;;  %v667_v17 = vld [vmem:[#allocation7 + $0x478] sm:$0xff]  ;;  %v4512_v50 = vcombine.low %v655_v40, %v659_v19 }
 0x1c6   :  { %4140 = vmatprep.subr.bf16.mxu1 %v4425_v45  ;;  %v626_v45 = vld [vmem:[#allocation7 + $0x330] sm:$0xff] }
 0x1c7   :  { %v4478_v26 = vcombine.low %v622_v56, %v626_v45 }
 0x1c8   :  { %3977 = vmatpush1.bf16.msra.mxu0 %v4422_v52  ;;  %v4479_v52 = vcombine.high %v622_v56, %v626_v45  ;;  %v671_v56 = vld [vmem:[#allocation7 + $0x498] sm:$0xff] }
 0x1c9   :  { %4141 = vmatpush1.bf16.msra.mxu1 %v4424_v6  ;;  %3978 = vmatprep.subr.bf16.mxu0 %v4431_v43  ;;  %v4481_v6 = vcombine.high %v623_v48, %v627_v46  ;;  %v630_v43 = vld [vmem:[#allocation7 + $0x350] sm:$0xff]  ;;  %v675_v45 = vld [vmem:[#allocation7 + $0x4b8] sm:$0xff]  ;;  %v4520_v46 = vcombine.low %v663_v63, %v667_v17 }
 0x1ca   :  { %4142 = vmatprep.subr.bf16.mxu1 %v4433_v16  ;;  %v634_v16 = vld [vmem:[#allocation7 + $0x370] sm:$0xff] }
 0x1cb   :  { %v4486_v61 = vcombine.low %v630_v43, %v634_v16 }
 0x1cc   :  { %3979 = vmatpush1.bf16.msra.mxu0 %v4430_v14  ;;  %v4487_v14 = vcombine.high %v630_v43, %v634_v16  ;;  %v679_v43 = vld [vmem:[#allocation7 + $0x4d8] sm:$0xff] }
 0x1cd   :  { %4143 = vmatpush1.bf16.msra.mxu1 %v4432_v25  ;;  %3980 = vmatprep.subr.bf16.mxu0 %v4439_v31  ;;  %v4489_v25 = vcombine.high %v631_v4, %v635_v54  ;;  %v638_v31 = vld [vmem:[#allocation7 + $0x390] sm:$0xff]  ;;  %v683_v16 = vld [vmem:[#allocation7 + $0x4f8] sm:$0xff] }
 0x1ce   :  { %4144 = vmatprep.subr.bf16.mxu1 %v4441_v39  ;;  %v642_v39 = vld [vmem:[#allocation7 + $0x3b0] sm:$0xff] }
 0x1cf   :  { %v4494_v10 = vcombine.low %v638_v31, %v642_v39 }
 0x1d0   :  { %3981 = vmatpush1.bf16.msra.mxu0 %v4438_v0  ;;  %v4495_v0 = vcombine.high %v638_v31, %v642_v39  ;;  %v691_v31 = vld [vmem:[#allocation7 + $0x538] sm:$0xff]  ;;  %v4536_v39 = vcombine.low %v679_v43, %v683_v16 }
 0x1d1   :  { %4145 = vmatpush1.bf16.msra.mxu1 %v4440_v1  ;;  %3982 = vmatprep.subr.bf16.mxu0 %v4447_v2  ;;  %v4497_v1 = vcombine.high %v639_v36, %v643_v58  ;;  %v646_v2 = vld [vmem:[#allocation7 + $0x3d0] sm:$0xff] }
 0x1d2   :  { %4146 = vmatprep.subr.bf16.mxu1 %v4449_v9  ;;  %v650_v9 = vld [vmem:[#allocation7 + $0x3f0] sm:$0xff] }
 0x1d3   :  { %v4502_v20 = vcombine.low %v646_v2, %v650_v9 }
 0x1d4   :  { %3983 = vmatpush1.bf16.msra.mxu0 %v4446_v23  ;;  %v4503_v23 = vcombine.high %v646_v2, %v650_v9 }
 0x1d5   :  { %4147 = vmatpush1.bf16.msra.mxu1 %v4448_v49  ;;  %3984 = vmatprep.subr.bf16.mxu0 %v4455_v28  ;;  %v4505_v49 = vcombine.high %v647_v12, %v651_v37  ;;  %v654_v28 = vld [vmem:[#allocation7 + $0x410] sm:$0xff] }
 0x1d6   :  { %4148 = vmatprep.subr.bf16.mxu1 %v4457_v18  ;;  %v658_v18 = vld [vmem:[#allocation7 + $0x430] sm:$0xff] }
 0x1d7   :  { %v4510_v62 = vcombine.low %v654_v28, %v658_v18 }
 0x1d8   :  { %3985 = vmatpush1.bf16.msra.mxu0 %v4454_v5  ;;  %v4511_v5 = vcombine.high %v654_v28, %v658_v18 }
 0x1d9   :  { %4149 = vmatpush1.bf16.msra.mxu1 %v4456_v57  ;;  %3986 = vmatprep.subr.bf16.mxu0 %v4463_v11  ;;  %v4513_v57 = vcombine.high %v655_v40, %v659_v19  ;;  %v662_v11 = vld [vmem:[#allocation7 + $0x450] sm:$0xff] }
 0x1da   :  { %4150 = vmatprep.subr.bf16.mxu1 %v4465_v34  ;;  %v666_v34 = vld [vmem:[#allocation7 + $0x470] sm:$0xff] }
 0x1db   :  { %v4518_v48 = vcombine.low %v662_v11, %v666_v34 }
 0x1dc   :  { %3987 = vmatpush1.bf16.msra.mxu0 %v4462_v8  ;;  %v4519_v8 = vcombine.high %v662_v11, %v666_v34 }
 0x1dd   :  { %4151 = vmatpush1.bf16.msra.mxu1 %v4464_v15  ;;  %3988 = vmatprep.subr.bf16.mxu0 %v4471_v55  ;;  %v670_v15 = vld [vmem:[#allocation7 + $0x490] sm:$0xff] }
 0x1de   :  { %4152 = vmatprep.subr.bf16.mxu1 %v4473_v42  ;;  %v674_v55 = vld [vmem:[#allocation7 + $0x4b0] sm:$0xff]  ;;  %v4521_v42 = vcombine.high %v663_v63, %v667_v17 }
 0x1df   :  { %v4526_v4 = vcombine.low %v670_v15, %v674_v55  ;;  %v718_v17 = vld [vmem:[#allocation7 + $0x610] sm:$0xff] }
 0x1e0   :  { %3989 = vmatpush1.bf16.msra.mxu0 %v4470_v51  ;;  %v4527_v51 = vcombine.high %v670_v15, %v674_v55  ;;  %v723_v15 = vld [vmem:[#allocation7 + $0x638] sm:$0xff] }
 0x1e1   :  { %4153 = vmatpush1.bf16.msra.mxu1 %v4472_v3  ;;  %3990 = vmatprep.subr.bf16.mxu0 %v4479_v52  ;;  %v4529_v3 = vcombine.high %v671_v56, %v675_v45  ;;  %v678_v52 = vld [vmem:[#allocation7 + $0x4d0] sm:$0xff] }
 0x1e2   :  { %4154 = vmatprep.subr.bf16.mxu1 %v4481_v6  ;;  %v682_v6 = vld [vmem:[#allocation7 + $0x4f0] sm:$0xff] }
 0x1e3   :  { %v4535_v54 = vcombine.high %v678_v52, %v682_v6 }
 0x1e4   :  { %3991 = vmatpush1.bf16.msra.mxu0 %v4478_v26  ;;  %v4537_v26 = vcombine.high %v679_v43, %v683_v16 }
 0x1e5   :  { %4155 = vmatpush1.bf16.msra.mxu1 %v4480_v7  ;;  %3992 = vmatprep.subr.bf16.mxu0 %v4487_v14  ;;  %v686_v7 = vld [vmem:[#allocation7 + $0x510] sm:$0xff] }
 0x1e6   :  { %4156 = vmatprep.subr.bf16.mxu1 %v4489_v25  ;;  %v690_v14 = vld [vmem:[#allocation7 + $0x530] sm:$0xff]  ;;  %v687_v25 = vld [vmem:[#allocation7 + $0x518] sm:$0xff] }
 0x1e7   :  { %v4543_v36 = vcombine.high %v686_v7, %v690_v14  ;;  %v4545_v58 = vcombine.high %v687_v25, %v691_v31  ;;  %v4542_v2 = vcombine.low %v686_v7, %v690_v14  ;;  %v4544_v9 = vcombine.low %v687_v25, %v691_v31 }
 0x1e8   :  { %3993 = vmatpush1.bf16.msra.mxu0 %v4486_v61  ;;  %v694_v61 = vld [vmem:[#allocation7 + $0x550] sm:$0xff] }
 0x1e9   :  { %4157 = vmatpush1.bf16.msra.mxu1 %v4488_v30  ;;  %3994 = vmatprep.subr.bf16.mxu0 %v4495_v0  ;;  %v698_v30 = vld [vmem:[#allocation7 + $0x570] sm:$0xff]  ;;  %v695_v0 = vld [vmem:[#allocation7 + $0x558] sm:$0xff] }
 0x1ea   :  { %4158 = vmatprep.subr.bf16.mxu1 %v4497_v1  ;;  %v699_v1 = vld [vmem:[#allocation7 + $0x578] sm:$0xff]  ;;  %v4551_v12 = vcombine.high %v694_v61, %v698_v30  ;;  %v4550_v28 = vcombine.low %v694_v61, %v698_v30 }
 0x1eb   :  { %v4553_v37 = vcombine.high %v695_v0, %v699_v1  ;;  %v4552_v18 = vcombine.low %v695_v0, %v699_v1 }
 0x1ec   :  { %3995 = vmatpush1.bf16.msra.mxu0 %v4494_v10  ;;  %v702_v10 = vld [vmem:[#allocation7 + $0x590] sm:$0xff] }
 0x1ed   :  { %4159 = vmatpush1.bf16.msra.mxu1 %v4496_v60  ;;  %3996 = vmatprep.subr.bf16.mxu0 %v4503_v23  ;;  %v706_v60 = vld [vmem:[#allocation7 + $0x5b0] sm:$0xff]  ;;  %v703_v23 = vld [vmem:[#allocation7 + $0x598] sm:$0xff] }
 0x1ee   :  { %4160 = vmatprep.subr.bf16.mxu1 %v4505_v49  ;;  %v707_v49 = vld [vmem:[#allocation7 + $0x5b8] sm:$0xff]  ;;  %v4559_v40 = vcombine.high %v702_v10, %v706_v60  ;;  %v4558_v11 = vcombine.low %v702_v10, %v706_v60 }
 0x1ef   :  { %v4561_v19 = vcombine.high %v703_v23, %v707_v49  ;;  %v4560_v34 = vcombine.low %v703_v23, %v707_v49 }
 0x1f0   :  { %3997 = vmatpush1.bf16.msra.mxu0 %v4502_v20  ;;  %v710_v20 = vld [vmem:[#allocation7 + $0x5d0] sm:$0xff] }
 0x1f1   :  { %4161 = vmatpush1.bf16.msra.mxu1 %v4504_v32  ;;  %4007 = vmatprep.subr.bf16.mxu0 %v4511_v5  ;;  %v714_v32 = vld [vmem:[#allocation7 + $0x5f0] sm:$0xff]  ;;  %v711_v5 = vld [vmem:[#allocation7 + $0x5d8] sm:$0xff] }
 0x1f2   :  { %4171 = vmatprep.subr.bf16.mxu1 %v4513_v57  ;;  %v715_v57 = vld [vmem:[#allocation7 + $0x5f8] sm:$0xff]  ;;  %v4566_v55 = vcombine.low %v710_v20, %v714_v32 }
 0x1f3   :  { %3999 = vmatmul.mubr.bf16.vlgmr.msra.gmra.mrb[4].mxu0 %v5429_v53  ;;  %v4569_v63 = vcombine.high %v711_v5, %v715_v57 }
 0x1f4   :  { %4163 = vmatmul.mubr.bf16.vlgmr.msra.gmra.mrb[4].mxu1 %v5429_v53  ;;  %4008 = vmatpush1.bf16.msra.mxu0 %v4510_v62  ;;  %v4528_v53 = vcombine.low %v671_v56, %v675_v45  ;;  %v4567_v62 = vcombine.high %v710_v20, %v714_v32 }
 0x1f5   :  { %4039 = vmatprep.mubr.bf16.mxu0 %v5443_v24  ;;  %4172 = vmatpush1.bf16.msra.mxu1 %v4512_v50  ;;  %v722_v50 = vld [vmem:[#allocation7 + $0x630] sm:$0xff] }
 0x1f6   :  { %4203 = vmatprep.mubr.bf16.mxu1 %v5443_v24  ;;  %4009 = vmatprep.subr.bf16.mxu0 %v4519_v8  ;;  %v4534_v24 = vcombine.low %v678_v52, %v682_v6  ;;  %v719_v8 = vld [vmem:[#allocation7 + $0x618] sm:$0xff]  ;;  %v4575_v56 = vcombine.high %v718_v17, %v722_v50  ;;  %v4574_v52 = vcombine.low %v718_v17, %v722_v50 }
 0x1f7   :  { %4173 = vmatprep.subr.bf16.mxu1 %v4521_v42  ;;  %v4568_v42 = vcombine.low %v711_v5, %v715_v57  ;;  %v4577_v45 = vcombine.high %v719_v8, %v723_v15  ;;  %v4576_v6 = vcombine.low %v719_v8, %v723_v15 }
 0x1f8   :  { %4010 = vmatpush1.bf16.msra.mxu0 %v4518_v48  ;;  %v726_v48 = vld [vmem:[#allocation7 + $0x650] sm:$0xff] }
 0x1f9   :  { %4174 = vmatpush1.bf16.msra.mxu1 %v4520_v46  ;;  %4011 = vmatprep.subr.bf16.mxu0 %v4527_v51  ;;  %v730_v46 = vld [vmem:[#allocation7 + $0x670] sm:$0xff]  ;;  %v727_v51 = vld [vmem:[#allocation7 + $0x658] sm:$0xff] }
 0x1fa   :  { %4175 = vmatprep.subr.bf16.mxu1 %v4529_v3  ;;  %v731_v3 = vld [vmem:[#allocation7 + $0x678] sm:$0xff]  ;;  %v4583_v43 = vcombine.high %v726_v48, %v730_v46  ;;  %v4582_v7 = vcombine.low %v726_v48, %v730_v46 }
 0x1fb   :  { %v4585_v16 = vcombine.high %v727_v51, %v731_v3  ;;  %v4584_v14 = vcombine.low %v727_v51, %v731_v3 }
 0x1fc   :  { %4012 = vmatpush1.bf16.msra.mxu0 %v4526_v4  ;;  %v734_v4 = vld [vmem:[#allocation7 + $0x690] sm:$0xff] }
 0x1fd   :  { %4176 = vmatpush1.bf16.msra.mxu1 %v4528_v53  ;;  %4013 = vmatprep.subr.bf16.mxu0 %v4535_v54  ;;  %v738_v53 = vld [vmem:[#allocation7 + $0x6b0] sm:$0xff]  ;;  %v735_v54 = vld [vmem:[#allocation7 + $0x698] sm:$0xff] }
 0x1fe   :  { %4177 = vmatprep.subr.bf16.mxu1 %v4537_v26  ;;  %v739_v26 = vld [vmem:[#allocation7 + $0x6b8] sm:$0xff]  ;;  %v4591_v25 = vcombine.high %v734_v4, %v738_v53  ;;  %v4590_v61 = vcombine.low %v734_v4, %v738_v53 }
 0x1ff   :  { %v4593_v31 = vcombine.high %v735_v54, %v739_v26  ;;  %v4592_v30 = vcombine.low %v735_v54, %v739_v26 }
 0x200   :  { %4014 = vmatpush1.bf16.msra.mxu0 %v4534_v24  ;;  %v742_v24 = vld [vmem:[#allocation7 + $0x6d0] sm:$0xff] }
 0x201   :  { %4178 = vmatpush1.bf16.msra.mxu1 %v4536_v39  ;;  %4015 = vmatprep.subr.bf16.mxu0 %v4543_v36  ;;  %v746_v39 = vld [vmem:[#allocation7 + $0x6f0] sm:$0xff]  ;;  %v743_v36 = vld [vmem:[#allocation7 + $0x6d8] sm:$0xff] }
 0x202   :  { %4179 = vmatprep.subr.bf16.mxu1 %v4545_v58  ;;  %v747_v58 = vld [vmem:[#allocation7 + $0x6f8] sm:$0xff]  ;;  %v4599_v0 = vcombine.high %v742_v24, %v746_v39  ;;  %v4598_v10 = vcombine.low %v742_v24, %v746_v39 }
 0x203   :  { %v4601_v1 = vcombine.high %v743_v36, %v747_v58  ;;  %v4600_v60 = vcombine.low %v743_v36, %v747_v58  ;;  %v795_v24 = vld [vmem:[#allocation7 + $0x878] sm:$0xff]  ;;  %v798_v58 = vld [vmem:[#allocation7 + $0x890] sm:$0xff] }
 0x204   :  { %4016 = vmatpush1.bf16.msra.mxu0 %v4542_v2  ;;  %v750_v2 = vld [vmem:[#allocation7 + $0x710] sm:$0xff] }
 0x205   :  { %4180 = vmatpush1.bf16.msra.mxu1 %v4544_v9  ;;  %4017 = vmatprep.subr.bf16.mxu0 %v4551_v12  ;;  %v754_v9 = vld [vmem:[#allocation7 + $0x730] sm:$0xff]  ;;  %v751_v12 = vld [vmem:[#allocation7 + $0x718] sm:$0xff] }
 0x206   :  { %4181 = vmatprep.subr.bf16.mxu1 %v4553_v37  ;;  %v755_v37 = vld [vmem:[#allocation7 + $0x738] sm:$0xff]  ;;  %v4607_v23 = vcombine.high %v750_v2, %v754_v9  ;;  %v4606_v20 = vcombine.low %v750_v2, %v754_v9 }
 0x207   :  { %v4609_v49 = vcombine.high %v751_v12, %v755_v37  ;;  %v4608_v32 = vcombine.low %v751_v12, %v755_v37 }
 0x208   :  { %4018 = vmatpush1.bf16.msra.mxu0 %v4550_v28  ;;  %v758_v28 = vld [vmem:[#allocation7 + $0x750] sm:$0xff] }
 0x209   :  { %4182 = vmatpush1.bf16.msra.mxu1 %v4552_v18  ;;  %4019 = vmatprep.subr.bf16.mxu0 %v4559_v40  ;;  %v762_v18 = vld [vmem:[#allocation7 + $0x770] sm:$0xff]  ;;  %v759_v40 = vld [vmem:[#allocation7 + $0x758] sm:$0xff] }
 0x20a   :  { %4183 = vmatprep.subr.bf16.mxu1 %v4561_v19  ;;  %v763_v19 = vld [vmem:[#allocation7 + $0x778] sm:$0xff]  ;;  %v4615_v5 = vcombine.high %v758_v28, %v762_v18  ;;  %v4614_v17 = vcombine.low %v758_v28, %v762_v18 }
 0x20b   :  { %v4617_v57 = vcombine.high %v759_v40, %v763_v19  ;;  %v4616_v50 = vcombine.low %v759_v40, %v763_v19  ;;  %v814_v19 = vld [vmem:[#allocation7 + $0x910] sm:$0xff] }
 0x20c   :  { %4020 = vmatpush1.bf16.msra.mxu0 %v4558_v11  ;;  %v766_v11 = vld [vmem:[#allocation7 + $0x790] sm:$0xff] }
 0x20d   :  { %4184 = vmatpush1.bf16.msra.mxu1 %v4560_v34  ;;  %4021 = vmatprep.subr.bf16.mxu0 %v4567_v62  ;;  %v770_v34 = vld [vmem:[#allocation7 + $0x7b0] sm:$0xff]  ;;  %v767_v62 = vld [vmem:[#allocation7 + $0x798] sm:$0xff] }
 0x20e   :  { %4185 = vmatprep.subr.bf16.mxu1 %v4569_v63  ;;  %v771_v63 = vld [vmem:[#allocation7 + $0x7b8] sm:$0xff]  ;;  %v4623_v8 = vcombine.high %v766_v11, %v770_v34  ;;  %v4622_v48 = vcombine.low %v766_v11, %v770_v34 }
 0x20f   :  { %v4625_v15 = vcombine.high %v767_v62, %v771_v63  ;;  %v4624_v46 = vcombine.low %v767_v62, %v771_v63  ;;  %v822_v62 = vld [vmem:[#allocation7 + $0x950] sm:$0xff] }
 0x210   :  { %4022 = vmatpush1.bf16.msra.mxu0 %v4566_v55  ;;  %v774_v55 = vld [vmem:[#allocation7 + $0x7d0] sm:$0xff] }
 0x211   :  { %4186 = vmatpush1.bf16.msra.mxu1 %v4568_v42  ;;  %4023 = vmatprep.subr.bf16.mxu0 %v4575_v56  ;;  %v778_v42 = vld [vmem:[#allocation7 + $0x7f0] sm:$0xff]  ;;  %v775_v56 = vld [vmem:[#allocation7 + $0x7d8] sm:$0xff] }
 0x212   :  { %4187 = vmatprep.subr.bf16.mxu1 %v4577_v45  ;;  %v779_v45 = vld [vmem:[#allocation7 + $0x7f8] sm:$0xff]  ;;  %v4631_v51 = vcombine.high %v774_v55, %v778_v42  ;;  %v4630_v4 = vcombine.low %v774_v55, %v778_v42  ;;  %v826_v63 = vld [vmem:[#allocation7 + $0x970] sm:$0xff] }
 0x213   :  { %v4633_v3 = vcombine.high %v775_v56, %v779_v45  ;;  %v4632_v53 = vcombine.low %v775_v56, %v779_v45  ;;  %v4679_v55 = vcombine.high %v822_v62, %v826_v63  ;;  %v830_v56 = vld [vmem:[#allocation7 + $0x990] sm:$0xff] }
 0x214   :  { %4024 = vmatpush1.bf16.msra.mxu0 %v4574_v52  ;;  %v782_v52 = vld [vmem:[#allocation7 + $0x810] sm:$0xff] }
 0x215   :  { %4188 = vmatpush1.bf16.msra.mxu1 %v4576_v6  ;;  %4025 = vmatprep.subr.bf16.mxu0 %v4583_v43  ;;  %v786_v6 = vld [vmem:[#allocation7 + $0x830] sm:$0xff]  ;;  %v783_v43 = vld [vmem:[#allocation7 + $0x818] sm:$0xff] }
 0x216   :  { %4189 = vmatprep.subr.bf16.mxu1 %v4585_v16  ;;  %v787_v16 = vld [vmem:[#allocation7 + $0x838] sm:$0xff]  ;;  %v4639_v54 = vcombine.high %v782_v52, %v786_v6  ;;  %v834_v45 = vld [vmem:[#allocation7 + $0x9b0] sm:$0xff] }
 0x217   :  { %v4641_v26 = vcombine.high %v783_v43, %v787_v16  ;;  %v4640_v39 = vcombine.low %v783_v43, %v787_v16  ;;  %v838_v43 = vld [vmem:[#allocation7 + $0x9d0] sm:$0xff] }
 0x218   :  { %4026 = vmatpush1.bf16.msra.mxu0 %v4582_v7  ;;  %v790_v7 = vld [vmem:[#allocation7 + $0x850] sm:$0xff] }
 0x219   :  { %4190 = vmatpush1.bf16.msra.mxu1 %v4584_v14  ;;  %4027 = vmatprep.subr.bf16.mxu0 %v4591_v25  ;;  %v794_v14 = vld [vmem:[#allocation7 + $0x870] sm:$0xff]  ;;  %v4638_v25 = vcombine.low %v782_v52, %v786_v6  ;;  %v4687_v52 = vcombine.high %v830_v56, %v834_v45 }
 0x21a   :  { %4191 = vmatprep.subr.bf16.mxu1 %v4593_v31  ;;  %v791_v31 = vld [vmem:[#allocation7 + $0x858] sm:$0xff]  ;;  %v4647_v36 = vcombine.high %v790_v7, %v794_v14  ;;  %v4646_v2 = vcombine.low %v790_v7, %v794_v14  ;;  %v842_v16 = vld [vmem:[#allocation7 + $0x9f0] sm:$0xff] }
 0x21b   :  { %v4648_v9 = vcombine.low %v791_v31, %v795_v24  ;;  %v4695_v7 = vcombine.high %v838_v43, %v842_v16 }
 0x21c   :  { %4028 = vmatpush1.bf16.msra.mxu0 %v4590_v61  ;;  %v802_v61 = vld [vmem:[#allocation7 + $0x8b0] sm:$0xff] }
 0x21d   :  { %4192 = vmatpush1.bf16.msra.mxu1 %v4592_v30  ;;  %4029 = vmatprep.subr.bf16.mxu0 %v4599_v0  ;;  %v4649_v30 = vcombine.high %v791_v31, %v795_v24  ;;  %v799_v0 = vld [vmem:[#allocation7 + $0x898] sm:$0xff]  ;;  %v4655_v12 = vcombine.high %v798_v58, %v802_v61  ;;  %v4654_v28 = vcombine.low %v798_v58, %v802_v61  ;;  %v850_v31 = vld [vmem:[#allocation7 + $0xa30] sm:$0xff] }
 0x21e   :  { %4193 = vmatprep.subr.bf16.mxu1 %v4601_v1  ;;  %v803_v1 = vld [vmem:[#allocation7 + $0x8b8] sm:$0xff] }
 0x21f   :  { %v4657_v37 = vcombine.high %v799_v0, %v803_v1  ;;  %v847_v24 = vld [vmem:[#allocation7 + $0xa18] sm:$0xff] }
 0x220   :  { %4030 = vmatpush1.bf16.msra.mxu0 %v4598_v10  ;;  %v806_v10 = vld [vmem:[#allocation7 + $0x8d0] sm:$0xff] }
 0x221   :  { %4194 = vmatpush1.bf16.msra.mxu1 %v4600_v60  ;;  %4031 = vmatprep.subr.bf16.mxu0 %v4607_v23  ;;  %v810_v60 = vld [vmem:[#allocation7 + $0x8f0] sm:$0xff]  ;;  %v807_v23 = vld [vmem:[#allocation7 + $0x8d8] sm:$0xff] }
 0x222   :  { %4195 = vmatprep.subr.bf16.mxu1 %v4609_v49  ;;  %v811_v49 = vld [vmem:[#allocation7 + $0x8f8] sm:$0xff]  ;;  %v4663_v18 = vcombine.high %v806_v10, %v810_v60 }
 0x223   :  { %v4665_v40 = vcombine.high %v807_v23, %v811_v49 }
 0x224   :  { %4032 = vmatpush1.bf16.msra.mxu0 %v4606_v20  ;;  %v818_v20 = vld [vmem:[#allocation7 + $0x930] sm:$0xff] }
 0x225   :  { %4196 = vmatpush1.bf16.msra.mxu1 %v4608_v32  ;;  %4033 = vmatprep.subr.bf16.mxu0 %v4615_v5  ;;  %v815_v32 = vld [vmem:[#allocation7 + $0x918] sm:$0xff]  ;;  %v4671_v11 = vcombine.high %v814_v19, %v818_v20 }
 0x226   :  { %4197 = vmatprep.subr.bf16.mxu1 %v4617_v57  ;;  %v819_v5 = vld [vmem:[#allocation7 + $0x938] sm:$0xff]  ;;  %v4664_v57 = vcombine.low %v807_v23, %v811_v49  ;;  %v862_v23 = vld [vmem:[#allocation7 + $0xa90] sm:$0xff] }
 0x227   :  { %v4673_v34 = vcombine.high %v815_v32, %v819_v5  ;;  %v866_v49 = vld [vmem:[#allocation7 + $0xab0] sm:$0xff] }
 0x228   :  { %4034 = vmatpush1.bf16.msra.mxu0 %v4614_v17  ;;  %v823_v17 = vld [vmem:[#allocation7 + $0x958] sm:$0xff] }
 0x229   :  { %4198 = vmatpush1.bf16.msra.mxu1 %v4616_v50  ;;  %4035 = vmatprep.subr.bf16.mxu0 %v4623_v8  ;;  %v827_v50 = vld [vmem:[#allocation7 + $0x978] sm:$0xff]  ;;  %v4670_v8 = vcombine.low %v814_v19, %v818_v20  ;;  %v4719_v19 = vcombine.high %v862_v23, %v866_v49 }
 0x22a   :  { %4199 = vmatprep.subr.bf16.mxu1 %v4625_v15  ;;  %v4672_v15 = vcombine.low %v815_v32, %v819_v5  ;;  %v4681_v42 = vcombine.high %v823_v17, %v827_v50  ;;  %v870_v32 = vld [vmem:[#allocation7 + $0xad0] sm:$0xff] }
 0x22b   :  { %v874_v5 = vld [vmem:[#allocation7 + $0xaf0] sm:$0xff] }
 0x22c   :  { %4036 = vmatpush1.bf16.msra.mxu0 %v4622_v48  ;;  %v831_v48 = vld [vmem:[#allocation7 + $0x998] sm:$0xff] }
 0x22d   :  { %4200 = vmatpush1.bf16.msra.mxu1 %v4624_v46  ;;  %4037 = vmatprep.subr.bf16.mxu0 %v4631_v51  ;;  %v835_v46 = vld [vmem:[#allocation7 + $0x9b8] sm:$0xff]  ;;  %v4678_v51 = vcombine.low %v822_v62, %v826_v63  ;;  %v4727_v62 = vcombine.high %v870_v32, %v874_v5 }
 0x22e   :  { %4201 = vmatprep.subr.bf16.mxu1 %v4633_v3  ;;  %v4680_v3 = vcombine.low %v823_v17, %v827_v50  ;;  %v4689_v6 = vcombine.high %v831_v48, %v835_v46  ;;  %v878_v17 = vld [vmem:[#allocation7 + $0xb10] sm:$0xff] }
 0x22f   :  { %v882_v50 = vld [vmem:[#allocation7 + $0xb30] sm:$0xff] }
 0x230   :  { %4038 = vmatpush1.bf16.msra.mxu0 %v4630_v4  ;;  %v839_v4 = vld [vmem:[#allocation7 + $0x9d8] sm:$0xff] }
 0x231   :  { %4202 = vmatpush1.bf16.msra.mxu1 %v4632_v53  ;;  %4048 = vmatprep.subr.bf16.mxu0 %v4639_v54  ;;  %v843_v53 = vld [vmem:[#allocation7 + $0x9f8] sm:$0xff]  ;;  %v4686_v54 = vcombine.low %v830_v56, %v834_v45  ;;  %v4735_v56 = vcombine.high %v878_v17, %v882_v50 }
 0x232   :  { %4212 = vmatprep.subr.bf16.mxu1 %v4641_v26  ;;  %v4688_v26 = vcombine.low %v831_v48, %v835_v46  ;;  %v4697_v14 = vcombine.high %v839_v4, %v843_v53  ;;  %v4696_v58 = vcombine.low %v839_v4, %v843_v53  ;;  %v886_v48 = vld [vmem:[#allocation7 + $0xb50] sm:$0xff] }
 0x233   :  { %4040 = vmatmul.mubr.bf16.vlgmr.msra.gmra.mrb[4].mxu0 %v5481_v13  ;;  %v890_v46 = vld [vmem:[#allocation7 + $0xb70] sm:$0xff] }
 0x234   :  { %4204 = vmatmul.mubr.bf16.vlgmr.msra.gmra.mrb[4].mxu1 %v5481_v13  ;;  %4049 = vmatpush1.bf16.msra.mxu0 %v4638_v25  ;;  %v4656_v13 = vcombine.low %v799_v0, %v803_v1  ;;  %v846_v25 = vld [vmem:[#allocation7 + $0xa10] sm:$0xff] }
 0x235   :  { %4080 = vmatprep.mubr.bf16.mxu0 %v5483_v47  ;;  %4213 = vmatpush1.bf16.msra.mxu1 %v4640_v39  ;;  %v851_v39 = vld [vmem:[#allocation7 + $0xa38] sm:$0xff]  ;;  %v4703_v61 = vcombine.high %v846_v25, %v850_v31  ;;  %v854_v0 = vld [vmem:[#allocation7 + $0xa50] sm:$0xff] }
 0x236   :  { %4244 = vmatprep.mubr.bf16.mxu1 %v5483_v47  ;;  %4050 = vmatprep.subr.bf16.mxu0 %v4647_v36  ;;  %v4662_v47 = vcombine.low %v806_v10, %v810_v60  ;;  %v4694_v36 = vcombine.low %v838_v43, %v842_v16  ;;  %v858_v1 = vld [vmem:[#allocation7 + $0xa70] sm:$0xff]  ;;  %v4743_v43 = vcombine.high %v886_v48, %v890_v46 }
 0x237   :  { %4214 = vmatprep.subr.bf16.mxu1 %v4649_v30  ;;  %v4705_v30 = vcombine.high %v847_v24, %v851_v39  ;;  %v4711_v10 = vcombine.high %v854_v0, %v858_v1  ;;  %v894_v4 = vld [vmem:[#allocation7 + $0xb90] sm:$0xff] }
 0x238   :  { %4051 = vmatpush1.bf16.msra.mxu0 %v4646_v2  ;;  %v855_v2 = vld [vmem:[#allocation7 + $0xa58] sm:$0xff]  ;;  %v898_v53 = vld [vmem:[#allocation7 + $0xbb0] sm:$0xff] }
 0x239   :  { %4215 = vmatpush1.bf16.msra.mxu1 %v4648_v9  ;;  %4052 = vmatprep.subr.bf16.mxu0 %v4655_v12  ;;  %v859_v9 = vld [vmem:[#allocation7 + $0xa78] sm:$0xff]  ;;  %v4702_v12 = vcombine.low %v846_v25, %v850_v31  ;;  %v4751_v25 = vcombine.high %v894_v4, %v898_v53 }
 0x23a   :  { %4216 = vmatprep.subr.bf16.mxu1 %v4657_v37  ;;  %v4704_v37 = vcombine.low %v847_v24, %v851_v39  ;;  %v4713_v60 = vcombine.high %v855_v2, %v859_v9  ;;  %v902_v24 = vld [vmem:[#allocation7 + $0xbd0] sm:$0xff] }
 0x23b   :  { %v906_v39 = vld [vmem:[#allocation7 + $0xbf0] sm:$0xff] }
 0x23c   :  { %4053 = vmatpush1.bf16.msra.mxu0 %v4654_v28  ;;  %v863_v28 = vld [vmem:[#allocation7 + $0xa98] sm:$0xff] }
 0x23d   :  { %4217 = vmatpush1.bf16.msra.mxu1 %v4656_v13  ;;  %4054 = vmatprep.subr.bf16.mxu0 %v4663_v18  ;;  %v867_v13 = vld [vmem:[#allocation7 + $0xab8] sm:$0xff]  ;;  %v4710_v18 = vcombine.low %v854_v0, %v858_v1  ;;  %v4759_v0 = vcombine.high %v902_v24, %v906_v39 }
 0x23e   :  { %4218 = vmatprep.subr.bf16.mxu1 %v4665_v40  ;;  %v4712_v40 = vcombine.low %v855_v2, %v859_v9  ;;  %v4721_v20 = vcombine.high %v863_v28, %v867_v13  ;;  %v910_v2 = vld [vmem:[#allocation7 + $0xc10] sm:$0xff] }
 0x23f   :  { %v914_v9 = vld [vmem:[#allocation7 + $0xc30] sm:$0xff] }
 0x240   :  { %4055 = vmatpush1.bf16.msra.mxu0 %v4662_v47  ;;  %v871_v47 = vld [vmem:[#allocation7 + $0xad8] sm:$0xff] }
 0x241   :  { %4219 = vmatpush1.bf16.msra.mxu1 %v4664_v57  ;;  %4056 = vmatprep.subr.bf16.mxu0 %v4671_v11  ;;  %v875_v57 = vld [vmem:[#allocation7 + $0xaf8] sm:$0xff]  ;;  %v4718_v11 = vcombine.low %v862_v23, %v866_v49  ;;  %v4767_v23 = vcombine.high %v910_v2, %v914_v9 }
 0x242   :  { %4220 = vmatprep.subr.bf16.mxu1 %v4673_v34  ;;  %v4720_v34 = vcombine.low %v863_v28, %v867_v13  ;;  %v4729_v63 = vcombine.high %v871_v47, %v875_v57  ;;  %v918_v28 = vld [vmem:[#allocation7 + $0xc50] sm:$0xff] }
 0x243   :  { %v922_v13 = vld [vmem:[#allocation7 + $0xc70] sm:$0xff] }
 0x244   :  { %4057 = vmatpush1.bf16.msra.mxu0 %v4670_v8  ;;  %v879_v8 = vld [vmem:[#allocation7 + $0xb18] sm:$0xff] }
 0x245   :  { %4221 = vmatpush1.bf16.msra.mxu1 %v4672_v15  ;;  %4058 = vmatprep.subr.bf16.mxu0 %v4679_v55  ;;  %v883_v15 = vld [vmem:[#allocation7 + $0xb38] sm:$0xff]  ;;  %v4726_v55 = vcombine.low %v870_v32, %v874_v5  ;;  %v4775_v32 = vcombine.high %v918_v28, %v922_v13  ;;  %v926_v5 = vld [vmem:[#allocation7 + $0xc90] sm:$0xff] }
 0x246   :  { %4222 = vmatprep.subr.bf16.mxu1 %v4681_v42  ;;  %v4728_v42 = vcombine.low %v871_v47, %v875_v57  ;;  %v4737_v45 = vcombine.high %v879_v8, %v883_v15  ;;  %v930_v47 = vld [vmem:[#allocation7 + $0xcb0] sm:$0xff] }
 0x248   :  { %4059 = vmatpush1.bf16.msra.mxu0 %v4678_v51  ;;  %v887_v51 = vld [vmem:[#allocation7 + $0xb58] sm:$0xff] }
 0x249   :  { %4223 = vmatpush1.bf16.msra.mxu1 %v4680_v3  ;;  %4060 = vmatprep.subr.bf16.mxu0 %v4687_v52  ;;  %v891_v3 = vld [vmem:[#allocation7 + $0xb78] sm:$0xff]  ;;  %v4734_v52 = vcombine.low %v878_v17, %v882_v50  ;;  %v4783_v17 = vcombine.high %v926_v5, %v930_v47 }
 0x24a   :  { %4224 = vmatprep.subr.bf16.mxu1 %v4689_v6  ;;  %v4736_v6 = vcombine.low %v879_v8, %v883_v15  ;;  %v4745_v16 = vcombine.high %v887_v51, %v891_v3  ;;  %v934_v8 = vld [vmem:[#allocation7 + $0xcd0] sm:$0xff] }
 0x24b   :  { %v938_v15 = vld [vmem:[#allocation7 + $0xcf0] sm:$0xff] }
 0x24c   :  { %4061 = vmatpush1.bf16.msra.mxu0 %v4686_v54  ;;  %v895_v54 = vld [vmem:[#allocation7 + $0xb98] sm:$0xff] }
 0x24d   :  { %4225 = vmatpush1.bf16.msra.mxu1 %v4688_v26  ;;  %4062 = vmatprep.subr.bf16.mxu0 %v4695_v7  ;;  %v899_v26 = vld [vmem:[#allocation7 + $0xbb8] sm:$0xff]  ;;  %v4742_v7 = vcombine.low %v886_v48, %v890_v46  ;;  %v942_v46 = vld [vmem:[#allocation7 + $0xd10] sm:$0xff] }
 0x24e   :  { %4226 = vmatprep.subr.bf16.mxu1 %v4697_v14  ;;  %v4744_v14 = vcombine.low %v887_v51, %v891_v3  ;;  %v4753_v31 = vcombine.high %v895_v54, %v899_v26  ;;  %v946_v51 = vld [vmem:[#allocation7 + $0xd30] sm:$0xff]  ;;  %v943_v3 = vld [vmem:[#allocation7 + $0xd18] sm:$0xff] }
 0x250   :  { %4063 = vmatpush1.bf16.msra.mxu0 %v4694_v36  ;;  %v903_v36 = vld [vmem:[#allocation7 + $0xbd8] sm:$0xff] }
 0x251   :  { %4227 = vmatpush1.bf16.msra.mxu1 %v4696_v58  ;;  %4064 = vmatprep.subr.bf16.mxu0 %v4703_v61  ;;  %v907_v58 = vld [vmem:[#allocation7 + $0xbf8] sm:$0xff]  ;;  %v4750_v61 = vcombine.low %v894_v4, %v898_v53  ;;  %v950_v4 = vld [vmem:[#allocation7 + $0xd50] sm:$0xff] }
 0x252   :  { %4228 = vmatprep.subr.bf16.mxu1 %v4705_v30  ;;  %v4752_v30 = vcombine.low %v895_v54, %v899_v26  ;;  %v4761_v1 = vcombine.high %v903_v36, %v907_v58  ;;  %v954_v53 = vld [vmem:[#allocation7 + $0xd70] sm:$0xff]  ;;  %v951_v54 = vld [vmem:[#allocation7 + $0xd58] sm:$0xff] }
 0x253   :  { %v955_v26 = vld [vmem:[#allocation7 + $0xd78] sm:$0xff] }
 0x254   :  { %4065 = vmatpush1.bf16.msra.mxu0 %v4702_v12  ;;  %v911_v12 = vld [vmem:[#allocation7 + $0xc18] sm:$0xff] }
 0x255   :  { %4229 = vmatpush1.bf16.msra.mxu1 %v4704_v37  ;;  %4066 = vmatprep.subr.bf16.mxu0 %v4711_v10  ;;  %v915_v37 = vld [vmem:[#allocation7 + $0xc38] sm:$0xff]  ;;  %v4758_v10 = vcombine.low %v902_v24, %v906_v39  ;;  %v4809_v24 = vcombine.high %v951_v54, %v955_v26  ;;  %v958_v39 = vld [vmem:[#allocation7 + $0xd90] sm:$0xff] }
 0x256   :  { %4230 = vmatprep.subr.bf16.mxu1 %v4713_v60  ;;  %v4760_v60 = vcombine.low %v903_v36, %v907_v58  ;;  %v4769_v49 = vcombine.high %v911_v12, %v915_v37  ;;  %v962_v36 = vld [vmem:[#allocation7 + $0xdb0] sm:$0xff] }
 0x258   :  { %4067 = vmatpush1.bf16.msra.mxu0 %v4710_v18  ;;  %v4766_v18 = vcombine.low %v910_v2, %v914_v9  ;;  %v4806_v9 = vcombine.low %v950_v4, %v954_v53 }
 0x259   :  { %4231 = vmatpush1.bf16.msra.mxu1 %v4712_v40  ;;  %4068 = vmatprep.subr.bf16.mxu0 %v4719_v19  ;;  %v919_v40 = vld [vmem:[#allocation7 + $0xc58] sm:$0xff] }
 0x25a   :  { %4232 = vmatprep.subr.bf16.mxu1 %v4721_v20  ;;  %v923_v19 = vld [vmem:[#allocation7 + $0xc78] sm:$0xff]  ;;  %v4768_v20 = vcombine.low %v911_v12, %v915_v37  ;;  %v4808_v37 = vcombine.low %v951_v54, %v955_v26  ;;  %v982_v26 = vld [vmem:[#allocation7 + $0xe50] sm:$0xff] }
 0x25b   :  { %v4777_v57 = vcombine.high %v919_v40, %v923_v19 }
 0x25c   :  { %4069 = vmatpush1.bf16.msra.mxu0 %v4718_v11  ;;  %v927_v11 = vld [vmem:[#allocation7 + $0xc98] sm:$0xff] }
 0x25d   :  { %4233 = vmatpush1.bf16.msra.mxu1 %v4720_v34  ;;  %4070 = vmatprep.subr.bf16.mxu0 %v4727_v62  ;;  %v931_v34 = vld [vmem:[#allocation7 + $0xcb8] sm:$0xff]  ;;  %v4774_v62 = vcombine.low %v918_v28, %v922_v13  ;;  %v970_v28 = vld [vmem:[#allocation7 + $0xdf0] sm:$0xff] }
 0x25e   :  { %4234 = vmatprep.subr.bf16.mxu1 %v4729_v63  ;;  %v4776_v63 = vcombine.low %v919_v40, %v923_v19  ;;  %v4785_v50 = vcombine.high %v927_v11, %v931_v34 }
 0x260   :  { %4071 = vmatpush1.bf16.msra.mxu0 %v4726_v55  ;;  %v935_v55 = vld [vmem:[#allocation7 + $0xcd8] sm:$0xff] }
 0x261   :  { %4235 = vmatpush1.bf16.msra.mxu1 %v4728_v42  ;;  %4072 = vmatprep.subr.bf16.mxu0 %v4735_v56  ;;  %v939_v42 = vld [vmem:[#allocation7 + $0xcf8] sm:$0xff]  ;;  %v4782_v56 = vcombine.low %v926_v5, %v930_v47 }
 0x262   :  { %4236 = vmatprep.subr.bf16.mxu1 %v4737_v45  ;;  %v4791_v45 = vcombine.high %v934_v8, %v938_v15  ;;  %v4793_v48 = vcombine.high %v935_v55, %v939_v42 }
 0x264   :  { %4073 = vmatpush1.bf16.msra.mxu0 %v4734_v52  ;;  %v947_v52 = vld [vmem:[#allocation7 + $0xd38] sm:$0xff] }
 0x265   :  { %4237 = vmatpush1.bf16.msra.mxu1 %v4736_v6  ;;  %4074 = vmatprep.subr.bf16.mxu0 %v4743_v43  ;;  %v4792_v6 = vcombine.low %v935_v55, %v939_v42  ;;  %v4799_v43 = vcombine.high %v942_v46, %v946_v51 }
 0x266   :  { %4238 = vmatprep.subr.bf16.mxu1 %v4745_v16  ;;  %v4801_v16 = vcombine.high %v943_v3, %v947_v52 }
 0x268   :  { %4075 = vmatpush1.bf16.msra.mxu0 %v4742_v7  ;;  %v4798_v7 = vcombine.low %v942_v46, %v946_v51  ;;  %v975_v51 = vld [vmem:[#allocation7 + $0xe18] sm:$0xff] }
 0x269   :  { %4239 = vmatpush1.bf16.msra.mxu1 %v4744_v14  ;;  %4076 = vmatprep.subr.bf16.mxu0 %v4751_v25  ;;  %v5518_v14 = vld [vmem:[#allocation8] sm:$0xff]  ;;  %v4800_v25 = vcombine.low %v943_v3, %v947_v52  ;;  %v979_v3 = vld [vmem:[#allocation7 + $0xe38] sm:$0xff] }
 0x26a   :  { %4240 = vmatprep.subr.bf16.mxu1 %v4753_v31  ;;  %v4807_v31 = vcombine.high %v950_v4, %v954_v53  ;;  %v1041_v58 = vrot.slane %v5518_v14, %v5241_v35  ;;  %v1045_v2 = vrot.slane %v5518_v14, %v5219_v22  ;;  %v1053_v12 = vrot.slane %v5518_v14, %v5253_v41 }
 0x26b   :  { %v4833_v54 = vcombine.high %v975_v51, %v979_v3 }
 0x26c   :  { %4077 = vmatpush1.bf16.msra.mxu0 %v4750_v61  ;;  %v959_v61 = vld [vmem:[#allocation7 + $0xd98] sm:$0xff] }
 0x26d   :  { %4241 = vmatpush1.bf16.msra.mxu1 %v4752_v30  ;;  %4078 = vmatprep.subr.bf16.mxu0 %v4759_v0  ;;  %v963_v30 = vld [vmem:[#allocation7 + $0xdb8] sm:$0xff]  ;;  %v5522_v0 = vld [vmem:[#allocation10] sm:$0xff] }
 0x26e   :  { %4242 = vmatprep.subr.bf16.mxu1 %v4761_v1  ;;  %v1049_v1 = vrot.slane %v5518_v14, %v5247_v38  ;;  %v4315_v42 = vrot.slane %v5522_v0, %v5247_v38 }
 0x270   :  { %4079 = vmatpush1.bf16.msra.mxu0 %v4758_v10  ;;  %v4815_v10 = vcombine.high %v958_v39, %v962_v36 }
 0x271   :  { %4243 = vmatpush1.bf16.msra.mxu1 %v4760_v60  ;;  %4089 = vmatprep.subr.bf16.mxu0 %v4767_v23  ;;  %v4817_v23 = vcombine.high %v959_v61, %v963_v30 }
 0x272   :  { %4253 = vmatprep.subr.bf16.mxu1 %v4769_v49  ;;  %v966_v49 = vld [vmem:[#allocation7 + $0xdd0] sm:$0xff] }
 0x273   :  { %4081 = vmatmul.mubr.bf16.vlgmr.msra.gmra.mrb[4].mxu0 %v5491_v29 }
 0x274   :  { %4245 = vmatmul.mubr.bf16.vlgmr.msra.gmra.mrb[4].mxu1 %v5491_v29  ;;  %4090 = vmatpush1.bf16.msra.mxu0 %v4766_v18  ;;  %v4784_v29 = vcombine.low %v927_v11, %v931_v34  ;;  %v4307_v18 = vrot.slane %v5522_v0, %v5241_v35  ;;  %v4816_v35 = vcombine.low %v959_v61, %v963_v30 }
 0x275   :  { %4121 = vmatprep.mubr.bf16.mxu0 %v5494_v44  ;;  %4254 = vmatpush1.bf16.msra.mxu1 %v4768_v20  ;;  %v967_v20 = vld [vmem:[#allocation7 + $0xdd8] sm:$0xff] }
 0x276   :  { %4285 = vmatprep.mubr.bf16.mxu1 %v5494_v44  ;;  %4091 = vmatprep.subr.bf16.mxu0 %v4775_v32  ;;  %v4790_v44 = vcombine.low %v934_v8, %v938_v15  ;;  %v971_v32 = vld [vmem:[#allocation7 + $0xdf8] sm:$0xff]  ;;  %v4823_v15 = vcombine.high %v966_v49, %v970_v28 }
 0x277   :  { %4255 = vmatprep.subr.bf16.mxu1 %v4777_v57  ;;  %v4311_v57 = vrot.slane %v5522_v0, %v5219_v22  ;;  %v4825_v22 = vcombine.high %v967_v20, %v971_v32 }
 0x278   :  { %4092 = vmatpush1.bf16.msra.mxu0 %v4774_v62  ;;  %v4814_v62 = vcombine.low %v958_v39, %v962_v36 }
 0x279   :  { %4256 = vmatpush1.bf16.msra.mxu1 %v4776_v63  ;;  %4093 = vmatprep.subr.bf16.mxu0 %v4783_v17 }
 0x27a   :  { %4257 = vmatprep.subr.bf16.mxu1 %v4785_v50 }
 0x27c   :  { %4094 = vmatpush1.bf16.msra.mxu0 %v4782_v56 }
 0x27d   :  { %4258 = vmatpush1.bf16.msra.mxu1 %v4784_v29  ;;  %4095 = vmatprep.subr.bf16.mxu0 %v4791_v45  ;;  %v974_v45 = vld [vmem:[#allocation7 + $0xe10] sm:$0xff] }
 0x27e   :  { %4259 = vmatprep.subr.bf16.mxu1 %v4793_v48  ;;  %v978_v48 = vld [vmem:[#allocation7 + $0xe30] sm:$0xff] }
 0x27f   :  { %v4831_v38 = vcombine.high %v974_v45, %v978_v48  ;;  %v4830_v36 = vcombine.low %v974_v45, %v978_v48  ;;  %v1026_v45 = vld [vmem:[#allocation7 + $0xfb0] sm:$0xff]  ;;  %v1023_v48 = vld [vmem:[#allocation7 + $0xf98] sm:$0xff] }
 0x280   :  { %4096 = vmatpush1.bf16.msra.mxu0 %v4790_v44 }
 0x281   :  { %4260 = vmatpush1.bf16.msra.mxu1 %v4792_v6  ;;  %4097 = vmatprep.subr.bf16.mxu0 %v4799_v43  ;;  %v4319_v6 = vrot.slane %v5522_v0, %v5253_v41  ;;  %v4822_v43 = vcombine.low %v966_v49, %v970_v28  ;;  %v4832_v41 = vcombine.low %v975_v51, %v979_v3  ;;  %v998_v49 = vld [vmem:[#allocation7 + $0xed0] sm:$0xff] }
 0x282   :  { %4261 = vmatprep.subr.bf16.mxu1 %v4801_v16  ;;  %v4824_v16 = vcombine.low %v967_v20, %v971_v32  ;;  %v1002_v28 = vld [vmem:[#allocation7 + $0xef0] sm:$0xff] }
 0x283   :  { %v4855_v20 = vcombine.high %v998_v49, %v1002_v28 }
 0x284   :  { %4098 = vmatpush1.bf16.msra.mxu0 %v4798_v7  ;;  %v986_v7 = vld [vmem:[#allocation7 + $0xe70] sm:$0xff] }
 0x285   :  { %4262 = vmatpush1.bf16.msra.mxu1 %v4800_v25  ;;  %4099 = vmatprep.subr.bf16.mxu0 %v4807_v31  ;;  %v983_v25 = vld [vmem:[#allocation7 + $0xe58] sm:$0xff] }
 0x286   :  { %v3795_v60 = vpop.f32.mrb[0].mxu0  ;;  %4263 = vmatprep.subr.bf16.mxu1 %v4809_v24  ;;  %v987_v31 = vld [vmem:[#allocation7 + $0xe78] sm:$0xff] }
 0x287   :  { %v4891_v13 = vadd.f32 %v3795_v60, %v1041_v58  ;;  %v3959_v40 = vpop.f32.mrb[0].mxu1  ;;  %v3797_v19 = vpop.f32.mrb[1].mxu0  ;;  %v4839_v58 = vcombine.high %v982_v26, %v986_v7  ;;  %v4841_v30 = vcombine.high %v983_v25, %v987_v31 }
 0x288   :  { %v4893_v5 = vadd.f32 %v3959_v40, %v1049_v1  ;;  %v4892_v47 = vadd.f32 %v3797_v19, %v1045_v2  ;;  %v3961_v11 = vpop.f32.mrb[1].mxu1  ;;  %v3799_v34 = vpop.f32.mrb[2].mxu0  ;;  %4100 = vmatpush1.bf16.msra.mxu0 %v4806_v9  ;;  %v990_v1 = vld [vmem:[#allocation7 + $0xe90] sm:$0xff]  ;;  %v991_v9 = vld [vmem:[#allocation7 + $0xe98] sm:$0xff] }
 0x289   :  { %v4294_v63 = vmax.f32 %v4891_v13, 0.0  ;;  %v4894_v17 = vadd.f32 %v3961_v11, %v1053_v12  ;;  %v3963_v50 = vpop.f32.mrb[2].mxu1  ;;  %4264 = vmatpush1.bf16.msra.mxu1 %v4808_v37  ;;  %v3800_v8 = vpop.f32.mrb[3].mxu0  ;;  %4101 = vmatprep.subr.bf16.mxu0 %v4815_v10  ;;  %v994_v2 = vld [vmem:[#allocation7 + $0xeb0] sm:$0xff]  ;;  %v995_v12 = vld [vmem:[#allocation7 + $0xeb8] sm:$0xff]  ;;  %v4838_v37 = vcombine.low %v982_v26, %v986_v7  ;;  %v4840_v10 = vcombine.low %v983_v25, %v987_v31 }
 0x28a   :  { %v4296_v55 = vmax.f32 %v4893_v5, 0.0  ;;  %v4295_v56 = vmax.f32 %v4892_v47, 0.0  ;;  %v3964_v29 = vpop.f32.mrb[3].mxu1  ;;  %4265 = vmatprep.subr.bf16.mxu1 %v4817_v23  ;;  %v4847_v60 = vcombine.high %v990_v1, %v994_v2  ;;  %v4849_v23 = vcombine.high %v991_v9, %v995_v12  ;;  %v999_v13 = vld [vmem:[#allocation7 + $0xed8] sm:$0xff]  ;;  %v1006_v5 = vld [vmem:[#allocation7 + $0xf10] sm:$0xff] }
 0x28b   :  { %v4344_v46 = vmul.f32 %v4307_v18, %v4294_v63  ;;  %v4297_v44 = vmax.f32 %v4894_v17, 0.0  ;;  %v1003_v18 = vld [vmem:[#allocation7 + $0xef8] sm:$0xff]  ;;  %v4846_v40 = vcombine.low %v990_v1, %v994_v2  ;;  %v4848_v19 = vcombine.low %v991_v9, %v995_v12  ;;  %v1010_v47 = vld [vmem:[#allocation7 + $0xf30] sm:$0xff] }
 0x28c   :  { %v4345_v52 = vmul.f32 %v4311_v57, %v4295_v56  ;;  %4102 = vmatpush1.bf16.msra.mxu0 %v4814_v62  ;;  %v4346_v4 = vmul.f32 %v4315_v42, %v4296_v55  ;;  %v4857_v32 = vcombine.high %v999_v13, %v1003_v18  ;;  %v1007_v57 = vld [vmem:[#allocation7 + $0xf18] sm:$0xff]  ;;  %v4854_v34 = vcombine.low %v998_v49, %v1002_v28  ;;  %v1014_v50 = vld [vmem:[#allocation7 + $0xf50] sm:$0xff] }
 0x28d   :  { %4266 = vmatpush1.bf16.msra.mxu1 %v4816_v35  ;;  %4103 = vmatprep.subr.bf16.mxu0 %v4823_v15  ;;  %v4347_v24 = vmul.f32 %v4319_v6, %v4297_v44  ;;  %v1011_v11 = vld [vmem:[#allocation7 + $0xf38] sm:$0xff]  ;;  %v4856_v62 = vcombine.low %v999_v13, %v1003_v18  ;;  %v4863_v63 = vcombine.high %v1006_v5, %v1010_v47  ;;  %v1018_v8 = vld [vmem:[#allocation7 + $0xf70] sm:$0xff] }
 0x28e   :  { %v4352_v53 = vadd.f32 %v4345_v52, %v4344_v46  ;;  %4267 = vmatprep.subr.bf16.mxu1 %v4825_v22  ;;  %v4865_v17 = vcombine.high %v1007_v57, %v1011_v11  ;;  %v1015_v35 = vld [vmem:[#allocation7 + $0xf58] sm:$0xff]  ;;  %v4862_v55 = vcombine.low %v1006_v5, %v1010_v47  ;;  %v4864_v42 = vcombine.low %v1007_v57, %v1011_v11  ;;  %v1022_v22 = vld [vmem:[#allocation7 + $0xf90] sm:$0xff] }
 0x28f   :  { %v1019_v15 = vld [vmem:[#allocation7 + $0xf78] sm:$0xff]  ;;  %v4871_v56 = vcombine.high %v1014_v50, %v1018_v8  ;;  %v4870_v51 = vcombine.low %v1014_v50, %v1018_v8  ;;  %v4879_v52 = vcombine.high %v1022_v22, %v1026_v45  ;;  %v1030_v6 = vld [vmem:[#allocation7 + $0xfd0] sm:$0xff]  ;;  %v1057_v31 = vrot.slane %v5518_v14, %v5226_v27 }
 0x290   :  { %v4353_v39 = vadd.f32 %v4352_v53, %v4346_v4  ;;  %4104 = vmatpush1.bf16.msra.mxu0 %v4822_v43  ;;  %v4873_v29 = vcombine.high %v1015_v35, %v1019_v15  ;;  %v1027_v46 = vld [vmem:[#allocation7 + $0xfb8] sm:$0xff]  ;;  %v4872_v3 = vcombine.low %v1015_v35, %v1019_v15  ;;  %v1034_v43 = vld [vmem:[#allocation7 + $0xff0] sm:$0xff]  ;;  %v4878_v4 = vcombine.low %v1022_v22, %v1026_v45 }
 0x291   :  { %4268 = vmatpush1.bf16.msra.mxu1 %v4824_v16  ;;  %4105 = vmatprep.subr.bf16.mxu0 %v4831_v38  ;;  %v4881_v44 = vcombine.high %v1023_v48, %v1027_v46  ;;  %v1031_v16 = vld [vmem:[#allocation7 + $0xfd8] sm:$0xff]  ;;  %v4880_v53 = vcombine.low %v1023_v48, %v1027_v46  ;;  %v4886_v7 = vcombine.low %v1030_v6, %v1034_v43 }
 0x292   :  { %v5538_v61 = vadd.f32 %v4353_v39, %v4347_v24  ;;  %4269 = vmatprep.subr.bf16.mxu1 %v4833_v54  ;;  %v1035_v38 = vld [vmem:[#allocation7 + $0xff8] sm:$0xff]  ;;  %v4887_v54 = vcombine.high %v1030_v6, %v1034_v43  ;;  %v1065_v24 = vrot.slane %v5518_v14, %v5589_v59  ;;  %v5590_v39 = vld [vmem:[#allocation14_spill] sm:$0xff]  ;;  %v4323_v1 = vrot.slane %v5522_v0, %v5226_v27 }
 0x293   :  { %v4889_v26 = vcombine.high %v1031_v16, %v1035_v38  ;;  %v4888_v25 = vcombine.low %v1031_v16, %v1035_v38  ;;  %v4331_v27 = vrot.slane %v5522_v0, %v5589_v59  ;;  %v4335_v47 = vrot.slane %v5522_v0, %v5237_v33 }
 0x294   :  { %4106 = vmatpush1.bf16.msra.mxu0 %v4830_v36  ;;  %v1061_v36 = vrot.slane %v5518_v14, %v5590_v39 }
 0x295   :  { %4270 = vmatpush1.bf16.msra.mxu1 %v4832_v41  ;;  %4107 = vmatprep.subr.bf16.mxu0 %v4839_v58  ;;  %v1069_v41 = vrot.slane %v5518_v14, %v5237_v33 }
 0x296   :  { %4271 = vmatprep.subr.bf16.mxu1 %v4841_v30 }
 0x298   :  { %4108 = vmatpush1.bf16.msra.mxu0 %v4838_v37  ;;  %v4327_v37 = vrot.slane %v5522_v0, %v5590_v39 }
 0x299   :  { %4272 = vmatpush1.bf16.msra.mxu1 %v4840_v10  ;;  %4109 = vmatprep.subr.bf16.mxu0 %v4847_v60 }
 0x29a   :  { %4273 = vmatprep.subr.bf16.mxu1 %v4849_v23 }
 0x29c   :  { %4110 = vmatpush1.bf16.msra.mxu0 %v4846_v40 }
 0x29d   :  { %4274 = vmatpush1.bf16.msra.mxu1 %v4848_v19  ;;  %4111 = vmatprep.subr.bf16.mxu0 %v4855_v20 }
 0x29e   :  { %4275 = vmatprep.subr.bf16.mxu1 %v4857_v32 }
 0x2a0   :  { %4112 = vmatpush1.bf16.msra.mxu0 %v4854_v34 }
 0x2a1   :  { %4276 = vmatpush1.bf16.msra.mxu1 %v4856_v62  ;;  %4113 = vmatprep.subr.bf16.mxu0 %v4863_v63 }
 0x2a2   :  { %4277 = vmatprep.subr.bf16.mxu1 %v4865_v17  ;;  %v4890_v17 = vld [vmem:[#allocation2] ss:$0 sm:$0xff] }
 0x2a4   :  { %4114 = vmatpush1.bf16.msra.mxu0 %v4862_v55 }
 0x2a5   :  { %4278 = vmatpush1.bf16.msra.mxu1 %v4864_v42  ;;  %4115 = vmatprep.subr.bf16.mxu0 %v4871_v56 }
 0x2a6   :  { %4279 = vmatprep.subr.bf16.mxu1 %v4873_v29 }
 0x2a8   :  { %4116 = vmatpush1.bf16.msra.mxu0 %v4870_v51 }
 0x2a9   :  { %4280 = vmatpush1.bf16.msra.mxu1 %v4872_v3  ;;  %4117 = vmatprep.subr.bf16.mxu0 %v4879_v52 }
 0x2aa   :  { %4281 = vmatprep.subr.bf16.mxu1 %v4881_v44 }
 0x2ac   :  { %4118 = vmatpush1.bf16.msra.mxu0 %v4878_v4 }
 0x2ad   :  { %4282 = vmatpush1.bf16.msra.mxu1 %v4880_v53  ;;  %4119 = vmatprep.subr.bf16.mxu0 %v4887_v54 }
 0x2ae   :  { %4283 = vmatprep.subr.bf16.mxu1 %v4889_v26 }
 0x2b0   :  { %4120 = vmatpush1.bf16.msra.mxu0 %v4886_v7 }
 0x2b1   :  { %4284 = vmatpush1.bf16.msra.mxu1 %v4888_v25 }
 0x2b3   :  { %4122 = vmatmul.mubr.bf16.vlgmr.msra.gmra.mrb[4].mxu0 %v5500_v21 }
 0x2b4   :  { %4286 = vmatmul.mubr.bf16.vlgmr.msra.gmra.mrb[4].mxu1 %v5500_v21 }
 0x386   :  { %v4123_v58 = vpop.f32.mrb[4].mxu0 }
 0x387   :  { %v4895_v30 = vadd.f32 %v4123_v58, %v1057_v31  ;;  %v4287_v2 = vpop.f32.mrb[4].mxu1  ;;  %v4125_v9 = vpop.f32.mrb[5].mxu0 }
 0x388   :  { %v4897_v21 = vadd.f32 %v4287_v2, %v1065_v24  ;;  %v4896_v12 = vadd.f32 %v4125_v9, %v1061_v36  ;;  %v4289_v10 = vpop.f32.mrb[5].mxu1  ;;  %v4127_v60 = vpop.f32.mrb[6].mxu0 }
 0x389   :  { %v4298_v23 = vmax.f32 %v4895_v30, 0.0  ;;  %v4898_v49 = vadd.f32 %v4289_v10, %v1069_v41  ;;  %v4291_v28 = vpop.f32.mrb[6].mxu1  ;;  %v4128_v13 = vpop.f32.mrb[7].mxu0 }
 0x38a   :  { %v4299_v18 = vmax.f32 %v4896_v12, 0.0  ;;  %v4292_v14 = vpop.f32.mrb[7].mxu1  ;;  %v4300_v19 = vmax.f32 %v4897_v21, 0.0 }
 0x38b   :  { %v4348_v40 = vmul.f32 %v4323_v1, %v4298_v23  ;;  %v4301_v5 = vmax.f32 %v4898_v49, 0.0 }
 0x38c   :  { %v4349_v20 = vmul.f32 %v4327_v37, %v4299_v18  ;;  %v4350_v57 = vmul.f32 %v4331_v27, %v4300_v19 }
 0x38d   :  { %v4355_v32 = vadd.f32 %v5538_v61, %v4348_v40  ;;  %v4351_v34 = vmul.f32 %v4335_v47, %v4301_v5 }
 0x38f   :  { %v4356_v11 = vadd.f32 %v4355_v32, %v4349_v20 }
 0x391   :  { %v4357_v62 = vadd.f32 %v4356_v11, %v4350_v57 }
 0x393   :  { %v4358_v63 = vadd.f32 %v4357_v62, %v4351_v34 }
 0x395   :  { %4359 = vadd.xlane.f32.xlu1 %v4358_v63 }
 0x422   :  { %v4360_v50 = vpop.xlane.xlu1 %4359 }
 0x423   :  { %v4368_v8 = vadd.f32 %v4890_v17, %v4360_v50 }
 0x425   :  { %4370 = vst.msk [vmem:[%s5569_s7] sm:$0xff] %vm4369_vm0, %v4368_v8 }
 0x426   :  { %4375 = vsyncpa [#allocation4], 1 }
 0x427   :  { %4376 = vsyncpa [#allocation6], 1 }
 0x428   :  { %4377 = vsyncpa [#allocation9], 1 }

</bundles_post_ra>
